<compile_context>
chip_gen: v5e
topology: v5e:2x2
jax: 0.10.0
libtpu: 0.0.40
codegen_flags: <defaults>
</compile_context>

<pallas_src>
import functools

import jax
import jax.numpy as jnp
from jax.experimental import pallas as pl
from jax.experimental.pallas import tpu as pltpu

# ----------------------- small EVA-style configuration -----------------------
# (real model: embed_dim=1408, depth=40, heads=16, patch=14, img=224)
IMG = 28
PATCH = 14
IN_CHANS = 3
EMBED_DIM = 32
DEPTH = 2
NUM_HEADS = 4
HEAD_DIM = EMBED_DIM // NUM_HEADS
MLP_HIDDEN = 64
NUM_CLASSES = 10
LN_EPS = 1e-6
HEAD_PAD = 128  # lane-dense padded logits width (sliced back to NUM_CLASSES)


# ------------------------------ shared helpers --------------------------------
def _ln(v, g, b):
    """LayerNorm over the last (lane) axis in f32.  g/b are (1, D)."""
    mean = jnp.mean(v, axis=-1, keepdims=True)
    var = jnp.mean(jnp.square(v - mean), axis=-1, keepdims=True)
    return (v - mean) * jax.lax.rsqrt(var + LN_EPS) * g + b


# ------------------------------ Pallas kernels -------------------------------
def _patch_embed_kernel(p_ref, w_ref, b_ref, cls_ref, pos_ref, o_ref):
    """One batch element: unfoldd patches -> embed + bias + pos, prepend cls."""
    patches = p_ref[0].astype(jnp.float32)                      # (Np, patch_dim)
    pos = pos_ref[...].astype(jnp.float32)                      # (T, D)
    tok = jnp.dot(patches, w_ref[...], preferred_element_type=jnp.float32)
    tok = tok + b_ref[...] + pos[1:, :]                         # (Np, D)
    cls = cls_ref[...] + pos[:1, :]                             # (1, D)
    n_patch = patches.shape[0]
    o_ref[:, pl.ds(0, 1), :] = cls[None].astype(o_ref.dtype)
    o_ref[:, pl.ds(1, n_patch), :] = tok[None].astype(o_ref.dtype)


def _eva_block_kernel(x_ref, n1g_ref, n1b_ref, qkvw_ref, qkvb_ref,
                      projw_ref, projb_ref, n2g_ref, n2b_ref,
                      fc1w_ref, fc1b_ref, fc2w_ref, fc2b_ref, o_ref):
    """One full transformer block for one batch element, all stages in VMEM."""
    x = x_ref[0].astype(jnp.float32)                            # (T, D)
    t, d = x.shape

    # --- attention branch: LN1 -> fused QKV -> per-head attention -> proj -> +res
    h = _ln(x, n1g_ref[...], n1b_ref[...])
    qkv = jnp.dot(h, qkvw_ref[...],
                  preferred_element_type=jnp.float32) + qkvb_ref[...]   # (T, 3D)
    proj_w = projw_ref[...]
    scale = HEAD_DIM ** -0.5
    attn = jnp.zeros((t, d), jnp.float32)
    for hi in range(NUM_HEADS):                                 # static unroll
        lo = hi * HEAD_DIM
        q = qkv[:, lo:lo + HEAD_DIM] * scale
        k = qkv[:, d + lo:d + lo + HEAD_DIM]
        v = qkv[:, 2 * d + lo:2 * d + lo + HEAD_DIM]
        s = jnp.dot(q, k.T, preferred_element_type=jnp.float32)        # (T, T)
        s = s - jnp.max(s, axis=-1, keepdims=True)
        p = jnp.exp(s)
        inv = pl.reciprocal(jnp.sum(p, axis=-1, keepdims=True), approx=True)
        o_h = jnp.dot(p, v, preferred_element_type=jnp.float32) * inv  # (T, hd)
        # proj(concat_h o_h) == sum_h o_h @ proj_w[head-h rows]: avoids lane concat
        attn = attn + jnp.dot(o_h, proj_w[lo:lo + HEAD_DIM, :],
                              preferred_element_type=jnp.float32)
    x = x + attn + projb_ref[...]                               # fused residual

    # --- MLP branch: LN2 -> fc1 + GELU -> fc2 -> +res
    h = _ln(x, n2g_ref[...], n2b_ref[...])
    h = jnp.dot(h, fc1w_ref[...], preferred_element_type=jnp.float32) + fc1b_ref[...]
    # TODO(synk): timm's nn.GELU is exact (erf); tanh approximation used here.
    h = jax.nn.gelu(h, approximate=True)
    h = jnp.dot(h, fc2w_ref[...], preferred_element_type=jnp.float32) + fc2b_ref[...]
    o_ref[0] = (x + h).astype(o_ref.dtype)


def _head_kernel(x_ref, g_ref, b_ref, w_ref, hb_ref, feat_ref, logit_ref):
    """Fused forward_head: mean-pool patch tokens -> fc_norm -> linear head."""
    x = x_ref[...].astype(jnp.float32)                          # (B, T, D)
    pooled = jnp.mean(x[:, 1:, :], axis=1)                      # (B, D)  exclude cls
    feats = _ln(pooled, g_ref[...], b_ref[...])
    feat_ref[...] = feats.astype(feat_ref.dtype)
    logits = jnp.dot(feats, w_ref[...],
                     preferred_element_type=jnp.float32) + hb_ref[...]
    logit_ref[...] = logits.astype(logit_ref.dtype)             # lane-padded


# ------------------------------ kernel wrappers -------------------------------
def patch_embed(patches, params):
    b, n_patch, pdim = patches.shape
    t = n_patch + 1
    d = EMBED_DIM
    return pl.pallas_call(
        _patch_embed_kernel,
        out_shape=jax.ShapeDtypeStruct((b, t, d), jnp.float32),
        grid=(b,),
        in_specs=[
            pl.BlockSpec((1, n_patch, pdim), lambda i: (i, 0, 0)),
            pl.BlockSpec((pdim, d), lambda i: (0, 0)),
            pl.BlockSpec((1, d), lambda i: (0, 0)),
            pl.BlockSpec((1, d), lambda i: (0, 0)),     # cls token
            pl.BlockSpec((t, d), lambda i: (0, 0)),     # pos embed
        ],
        out_specs=pl.BlockSpec((1, t, d), lambda i: (i, 0, 0)),
        compiler_params=pltpu.CompilerParams(dimension_semantics=("parallel",)),
    )(patches, params["patch_w"], params["patch_b"].reshape(1, d),
      params["cls_token"].reshape(1, d), params["pos_embed"].reshape(t, d))


def eva_block(x_tok, p):
    b, t, d = x_tok.shape

    def wspec(shape):
        return pl.BlockSpec(shape, lambda i: (0, 0))

    return pl.pallas_call(
        _eva_block_kernel,
        out_shape=jax.ShapeDtypeStruct((b, t, d), jnp.float32),
        grid=(b,),
        in_specs=[
            pl.BlockSpec((1, t, d), lambda i: (i, 0, 0)),
            wspec((1, d)), wspec((1, d)),                     # norm1 g/b
            wspec((d, 3 * d)), wspec((1, 3 * d)),             # qkv w/b
            wspec((d, d)), wspec((1, d)),                     # proj w/b
            wspec((1, d)), wspec((1, d)),                     # norm2 g/b
            wspec((d, MLP_HIDDEN)), wspec((1, MLP_HIDDEN)),   # fc1 w/b
            wspec((MLP_HIDDEN, d)), wspec((1, d)),            # fc2 w/b
        ],
        out_specs=pl.BlockSpec((1, t, d), lambda i: (i, 0, 0)),
        compiler_params=pltpu.CompilerParams(dimension_semantics=("parallel",)),
    )(x_tok,
      p["norm1_g"].reshape(1, d), p["norm1_b"].reshape(1, d),
      p["qkv_w"], p["qkv_b"].reshape(1, 3 * d),
      p["proj_w"], p["proj_b"].reshape(1, d),
      p["norm2_g"].reshape(1, d), p["norm2_b"].reshape(1, d),
      p["fc1_w"], p["fc1_b"].reshape(1, MLP_HIDDEN),
      p["fc2_w"], p["fc2_b"].reshape(1, d))


def fused_head(features, params):
    b, t, d = features.shape
    head_w = jnp.pad(params["head_w"], ((0, 0), (0, HEAD_PAD - NUM_CLASSES)))
    head_b = jnp.pad(params["head_b"], (0, HEAD_PAD - NUM_CLASSES)).reshape(1, HEAD_PAD)
    feats, logits = pl.pallas_call(
        _head_kernel,
        out_shape=(jax.ShapeDtypeStruct((b, d), jnp.float32),
                   jax.ShapeDtypeStruct((b, HEAD_PAD), jnp.float32)),
        grid=(1,),
        in_specs=[
            pl.BlockSpec((b, t, d), lambda i: (0, 0, 0)),
            pl.BlockSpec((1, d), lambda i: (0, 0)),
            pl.BlockSpec((1, d), lambda i: (0, 0)),
            pl.BlockSpec((d, HEAD_PAD), lambda i: (0, 0)),
            pl.BlockSpec((1, HEAD_PAD), lambda i: (0, 0)),
        ],
        out_specs=(pl.BlockSpec((b, d), lambda i: (0, 0)),
                   pl.BlockSpec((b, HEAD_PAD), lambda i: (0, 0))),
    )(features, params["fc_norm_g"].reshape(1, d),
      params["fc_norm_b"].reshape(1, d), head_w, head_b)
    return logits[:, :NUM_CLASSES], feats


# ------------------------------- model (glue) --------------------------------
def extract_patches(x):
    # NCHW -> (B, num_patches, C*p*p) with per-patch flatten order (C, ph, pw),
    # matching torch Conv2d weight layout (D, C, p, p) flattened.
    # TODO(synk): at real sizes fold this unfold into the patch-embed matmul's
    # BlockSpec index_map instead of an XLA 6-D transpose.
    b, c, h, w = x.shape
    hp, wp = h // PATCH, w // PATCH
    x = x.reshape(b, c, hp, PATCH, wp, PATCH)
    x = x.transpose(0, 2, 4, 1, 3, 5)
    return x.reshape(b, hp * wp, c * PATCH * PATCH)


def forward_features(x, params):
    patches = extract_patches(x)                 # (B, Np, C*p*p)
    x_tok = patch_embed(patches, params)         # (B, T, D) = embed + cls + pos
    for blk in params["blocks"]:
        x_tok = eva_block(x_tok, blk)
    # Eva with global_pool='avg': self.norm is Identity (fc_norm lives in the head).
    return x_tok


def eva_forward(x, params, return_features=False):
    features = forward_features(x, params)
    pred, pre_logits_features = fused_head(features, params)
    if return_features:
        return pred, pre_logits_features
    return pred


# --------------------------- deterministic weights ---------------------------
def init_params(key):
    keys = iter(jax.random.split(key, 64))

    def nrm(shape, std=0.02):
        return (std * jax.random.normal(next(keys), shape)).astype(jnp.float32)

    def zeros(shape):
        return jnp.zeros(shape, jnp.float32)

    def ones(shape):
        return jnp.ones(shape, jnp.float32)

    patch_dim = IN_CHANS * PATCH * PATCH
    n_tokens = (IMG // PATCH) ** 2 + 1
    params = {
        "patch_w": nrm((patch_dim, EMBED_DIM)),
        "patch_b": zeros((EMBED_DIM,)),
        "cls_token": nrm((1, 1, EMBED_DIM)),
        "pos_embed": nrm((1, n_tokens, EMBED_DIM)),
        "fc_norm_g": ones((EMBED_DIM,)),
        "fc_norm_b": zeros((EMBED_DIM,)),
        "head_w": nrm((EMBED_DIM, NUM_CLASSES)),
        "head_b": zeros((NUM_CLASSES,)),
        "blocks": [],
    }
    for _ in range(DEPTH):
        q_b = nrm((EMBED_DIM,))
        v_b = nrm((EMBED_DIM,))
        params["blocks"].append({
            "norm1_g": ones((EMBED_DIM,)),
            "norm1_b": zeros((EMBED_DIM,)),
            "qkv_w": nrm((EMBED_DIM, 3 * EMBED_DIM)),
            # EVA: learnable q/v bias, k bias fixed at zero.
            "qkv_b": jnp.concatenate([q_b, zeros((EMBED_DIM,)), v_b]),
            "proj_w": nrm((EMBED_DIM, EMBED_DIM)),
            "proj_b": zeros((EMBED_DIM,)),
            "norm2_g": ones((EMBED_DIM,)),
            "norm2_b": zeros((EMBED_DIM,)),
            "fc1_w": nrm((EMBED_DIM, MLP_HIDDEN)),
            "fc1_b": zeros((MLP_HIDDEN,)),
            "fc2_w": nrm((MLP_HIDDEN, EMBED_DIM)),
            "fc2_b": zeros((EMBED_DIM,)),
        })
    return params


# ------------------------------------ main ------------------------------------
if __name__ == "__main__":
    key = jax.random.PRNGKey(0)
    pkey, xkey = jax.random.split(key)
    params = init_params(pkey)
    x = jax.random.normal(xkey, (2, IN_CHANS, IMG, IMG), dtype=jnp.float32)

    pred = jax.block_until_ready(jax.jit(eva_forward)(x, params))
    assert pred.shape == (2, NUM_CLASSES), pred.shape
    assert jnp.all(jnp.isfinite(pred))

    fwd_with_feats = jax.jit(functools.partial(eva_forward, return_features=True))
    pred2, pre_logits = jax.block_until_ready(fwd_with_feats(x, params))
    assert pred2.shape == (2, NUM_CLASSES), pred2.shape
    assert pre_logits.shape == (2, EMBED_DIM), pre_logits.shape
    assert jnp.all(jnp.isfinite(pre_logits))

    print("KERNEL_OK")
</pallas_src>

<mosaic_0001>
module attributes {stable_mosaic.version = 11 : i64} {
  func.func @_patch_embed_kernel(%arg0: i32, %arg1: memref<1x4x588xf32, #tpu.memory_space<vmem>>, %arg2: memref<588x32xf32, #tpu.memory_space<vmem>>, %arg3: memref<1x32xf32, #tpu.memory_space<vmem>>, %arg4: memref<1x32xf32, #tpu.memory_space<vmem>>, %arg5: memref<5x32xf32, #tpu.memory_space<vmem>>, %arg6: memref<1x5x32xf32, #tpu.memory_space<vmem>>) attributes {dimension_semantics = [#tpu.dimension_semantics<parallel>], iteration_bounds = array<i64: 2>, scalar_prefetch = 0 : i64, scratch_operands = 0 : i64, tpu.core_type = #tpu.core_type<tc>, window_params = [{transform_indices = @transform_0, window_bounds = array<i64: 1, 4, 588>}, {pipeline_mode = #tpu.pipeline_mode<synchronous>, transform_indices = @transform_1, window_bounds = array<i64: 588, 32>}, {pipeline_mode = #tpu.pipeline_mode<synchronous>, transform_indices = @transform_2, window_bounds = array<i64: 1, 32>}, {pipeline_mode = #tpu.pipeline_mode<synchronous>, transform_indices = @transform_3, window_bounds = array<i64: 1, 32>}, {pipeline_mode = #tpu.pipeline_mode<synchronous>, transform_indices = @transform_4, window_bounds = array<i64: 5, 32>}, {transform_indices = @transform_5, window_bounds = array<i64: 1, 5, 32>}]} {
    %c0 = arith.constant 0 : index
    %c0_0 = arith.constant 0 : index
    %c0_1 = arith.constant 0 : index
    %0 = vector.load %arg1[%c0, %c0_0, %c0_1] : memref<1x4x588xf32, #tpu.memory_space<vmem>>, vector<1x4x588xf32>
    %1 = vector.shape_cast %0 : vector<1x4x588xf32> to vector<4x588xf32>
    %c0_2 = arith.constant 0 : index
    %c0_3 = arith.constant 0 : index
    %2 = vector.load %arg5[%c0_2, %c0_3] : memref<5x32xf32, #tpu.memory_space<vmem>>, vector<5x32xf32>
    %c0_4 = arith.constant 0 : index
    %c0_5 = arith.constant 0 : index
    %3 = vector.load %arg2[%c0_4, %c0_5] : memref<588x32xf32, #tpu.memory_space<vmem>>, vector<588x32xf32>
    %cst = arith.constant dense<0.000000e+00> : vector<4x32xf32>
    %4 = tpu.matmul %1, %3, %cst {dimension_numbers = #tpu.dot_dimension_numbers<[1], [0], [0], [1], [0, 0, 1, 1], [], []>} : vector<4x588xf32>, vector<588x32xf32>, vector<4x32xf32> -> vector<4x32xf32>
    %c0_6 = arith.constant 0 : index
    %c0_7 = arith.constant 0 : index
    %5 = vector.load %arg3[%c0_6, %c0_7] : memref<1x32xf32, #tpu.memory_space<vmem>>, vector<1x32xf32>
    %6 = vector.broadcast %5 : vector<1x32xf32> to vector<4x32xf32>
    %7 = arith.addf %4, %6 : vector<4x32xf32>
    %8 = vector.extract_strided_slice %2 {offsets = [1, 0], sizes = [4, 32], strides = [1, 1]} : vector<5x32xf32> to vector<4x32xf32>
    %9 = arith.addf %7, %8 : vector<4x32xf32>
    %c0_8 = arith.constant 0 : index
    %c0_9 = arith.constant 0 : index
    %10 = vector.load %arg4[%c0_8, %c0_9] : memref<1x32xf32, #tpu.memory_space<vmem>>, vector<1x32xf32>
    %11 = vector.extract_strided_slice %2 {offsets = [0, 0], sizes = [1, 32], strides = [1, 1]} : vector<5x32xf32> to vector<1x32xf32>
    %12 = arith.addf %10, %11 : vector<1x32xf32>
    %13 = vector.shape_cast %12 : vector<1x32xf32> to vector<1x1x32xf32>
    %c0_10 = arith.constant 0 : index
    %c0_11 = arith.constant 0 : index
    %c0_12 = arith.constant 0 : index
    %14 = vector.load %arg6[%c0_10, %c0_11, %c0_12] : memref<1x5x32xf32, #tpu.memory_space<vmem>>, vector<1x1x32xf32>
    tpu.vector_store %arg6[%c0_10, %c0_11, %c0_12], %13 {strides = array<i32>} : memref<1x5x32xf32, #tpu.memory_space<vmem>>, vector<1x1x32xf32>,
    %15 = vector.shape_cast %9 : vector<4x32xf32> to vector<1x4x32xf32>
    %c0_13 = arith.constant 0 : index
    %c1 = arith.constant 1 : index
    %c0_14 = arith.constant 0 : index
    %16 = vector.load %arg6[%c0_13, %c1, %c0_14] : memref<1x5x32xf32, #tpu.memory_space<vmem>>, vector<1x4x32xf32>
    tpu.vector_store %arg6[%c0_13, %c1, %c0_14], %15 {strides = array<i32>} : memref<1x5x32xf32, #tpu.memory_space<vmem>>, vector<1x4x32xf32>,
    return
  }
  func.func @transform_0(%arg0: i32) -> (i32, i32, i32) {
    %c0_i32 = arith.constant 0 : i32
    %c0_i32_0 = arith.constant 0 : i32
    %c0_i32_1 = arith.constant 0 : i32
    return %arg0, %c0_i32, %c0_i32_0 : i32, i32, i32
  }
  func.func @transform_1(%arg0: i32) -> (i32, i32) {
    %c0_i32 = arith.constant 0 : i32
    %c0_i32_0 = arith.constant 0 : i32
    %c0_i32_1 = arith.constant 0 : i32
    return %c0_i32, %c0_i32_0 : i32, i32
  }
  func.func @transform_2(%arg0: i32) -> (i32, i32) {
    %c0_i32 = arith.constant 0 : i32
    %c0_i32_0 = arith.constant 0 : i32
    %c0_i32_1 = arith.constant 0 : i32
    return %c0_i32, %c0_i32_0 : i32, i32
  }
  func.func @transform_3(%arg0: i32) -> (i32, i32) {
    %c0_i32 = arith.constant 0 : i32
    %c0_i32_0 = arith.constant 0 : i32
    %c0_i32_1 = arith.constant 0 : i32
    return %c0_i32, %c0_i32_0 : i32, i32
  }
  func.func @transform_4(%arg0: i32) -> (i32, i32) {
    %c0_i32 = arith.constant 0 : i32
    %c0_i32_0 = arith.constant 0 : i32
    %c0_i32_1 = arith.constant 0 : i32
    return %c0_i32, %c0_i32_0 : i32, i32
  }
  func.func @transform_5(%arg0: i32) -> (i32, i32, i32) {
    %c0_i32 = arith.constant 0 : i32
    %c0_i32_0 = arith.constant 0 : i32
    %c0_i32_1 = arith.constant 0 : i32
    return %arg0, %c0_i32, %c0_i32_0 : i32, i32, i32
  }
}

module attributes {stable_mosaic.version = 11 : i64} {
  func.func @_eva_block_kernel(%arg0: i32, %arg1: memref<1x5x32xf32, #tpu.memory_space<vmem>>, %arg2: memref<1x32xf32, #tpu.memory_space<vmem>>, %arg3: memref<1x32xf32, #tpu.memory_space<vmem>>, %arg4: memref<32x96xf32, #tpu.memory_space<vmem>>, %arg5: memref<1x96xf32, #tpu.memory_space<vmem>>, %arg6: memref<32x32xf32, #tpu.memory_space<vmem>>, %arg7: memref<1x32xf32, #tpu.memory_space<vmem>>, %arg8: memref<1x32xf32, #tpu.memory_space<vmem>>, %arg9: memref<1x32xf32, #tpu.memory_space<vmem>>, %arg10: memref<32x64xf32, #tpu.memory_space<vmem>>, %arg11: memref<1x64xf32, #tpu.memory_space<vmem>>, %arg12: memref<64x32xf32, #tpu.memory_space<vmem>>, %arg13: memref<1x32xf32, #tpu.memory_space<vmem>>, %arg14: memref<1x5x32xf32, #tpu.memory_space<vmem>>) attributes {dimension_semantics = [#tpu.dimension_semantics<parallel>], iteration_bounds = array<i64: 2>, scalar_prefetch = 0 : i64, scratch_operands = 0 : i64, tpu.core_type = #tpu.core_type<tc>, window_params = [{transform_indices = @transform_0, window_bounds = array<i64: 1, 5, 32>}, {pipeline_mode = #tpu.pipeline_mode<synchronous>, transform_indices = @transform_1, window_bounds = array<i64: 1, 32>}, {pipeline_mode = #tpu.pipeline_mode<synchronous>, transform_indices = @transform_2, window_bounds = array<i64: 1, 32>}, {pipeline_mode = #tpu.pipeline_mode<synchronous>, transform_indices = @transform_3, window_bounds = array<i64: 32, 96>}, {pipeline_mode = #tpu.pipeline_mode<synchronous>, transform_indices = @transform_4, window_bounds = array<i64: 1, 96>}, {pipeline_mode = #tpu.pipeline_mode<synchronous>, transform_indices = @transform_5, window_bounds = array<i64: 32, 32>}, {pipeline_mode = #tpu.pipeline_mode<synchronous>, transform_indices = @transform_6, window_bounds = array<i64: 1, 32>}, {pipeline_mode = #tpu.pipeline_mode<synchronous>, transform_indices = @transform_7, window_bounds = array<i64: 1, 32>}, {pipeline_mode = #tpu.pipeline_mode<synchronous>, transform_indices = @transform_8, window_bounds = array<i64: 1, 32>}, {pipeline_mode = #tpu.pipeline_mode<synchronous>, transform_indices = @transform_9, window_bounds = array<i64: 32, 64>}, {pipeline_mode = #tpu.pipeline_mode<synchronous>, transform_indices = @transform_10, window_bounds = array<i64: 1, 64>}, {pipeline_mode = #tpu.pipeline_mode<synchronous>, transform_indices = @transform_11, window_bounds = array<i64: 64, 32>}, {pipeline_mode = #tpu.pipeline_mode<synchronous>, transform_indices = @transform_12, window_bounds = array<i64: 1, 32>}, {transform_indices = @transform_13, window_bounds = array<i64: 1, 5, 32>}]} {
    %c0 = arith.constant 0 : index
    %c0_0 = arith.constant 0 : index
    %c0_1 = arith.constant 0 : index
    %0 = vector.load %arg1[%c0, %c0_0, %c0_1] : memref<1x5x32xf32, #tpu.memory_space<vmem>>, vector<1x5x32xf32>
    %1 = vector.shape_cast %0 : vector<1x5x32xf32> to vector<5x32xf32>
    %c0_2 = arith.constant 0 : index
    %c0_3 = arith.constant 0 : index
    %2 = vector.load %arg2[%c0_2, %c0_3] : memref<1x32xf32, #tpu.memory_space<vmem>>, vector<1x32xf32>
    %c0_4 = arith.constant 0 : index
    %c0_5 = arith.constant 0 : index
    %3 = vector.load %arg3[%c0_4, %c0_5] : memref<1x32xf32, #tpu.memory_space<vmem>>, vector<1x32xf32>
    %cst = arith.constant dense<0.000000e+00> : vector<5xf32>
    %4 = vector.multi_reduction <add>, %1, %cst [1] : vector<5x32xf32> to vector<5xf32>
    %5 = vector.shape_cast %4 : vector<5xf32> to vector<5x1xf32>
    %cst_6 = arith.constant 3.200000e+01 : f32
    %6 = vector.broadcast %cst_6 : f32 to vector<5x1xf32>
    %7 = arith.divf %5, %6 : vector<5x1xf32>
    %8 = vector.broadcast %7 : vector<5x1xf32> to vector<5x32xf32>
    %9 = arith.subf %1, %8 : vector<5x32xf32>
    %10 = arith.mulf %9, %9 : vector<5x32xf32>
    %cst_7 = arith.constant dense<0.000000e+00> : vector<5xf32>
    %11 = vector.multi_reduction <add>, %10, %cst_7 [1] : vector<5x32xf32> to vector<5xf32>
    %12 = vector.shape_cast %11 : vector<5xf32> to vector<5x1xf32>
    %cst_8 = arith.constant 3.200000e+01 : f32
    %13 = vector.broadcast %cst_8 : f32 to vector<5x1xf32>
    %14 = arith.divf %12, %13 : vector<5x1xf32>
    %15 = vector.broadcast %7 : vector<5x1xf32> to vector<5x32xf32>
    %16 = arith.subf %1, %15 : vector<5x32xf32>
    %cst_9 = arith.constant 9.99999997E-7 : f32
    %17 = vector.broadcast %cst_9 : f32 to vector<5x1xf32>
    %18 = arith.addf %14, %17 : vector<5x1xf32>
    %19 = math.rsqrt %18 : vector<5x1xf32>
    %20 = vector.broadcast %19 : vector<5x1xf32> to vector<5x32xf32>
    %21 = arith.mulf %16, %20 : vector<5x32xf32>
    %22 = vector.broadcast %2 : vector<1x32xf32> to vector<5x32xf32>
    %23 = arith.mulf %21, %22 : vector<5x32xf32>
    %24 = vector.broadcast %3 : vector<1x32xf32> to vector<5x32xf32>
    %25 = arith.addf %23, %24 : vector<5x32xf32>
    %c0_10 = arith.constant 0 : index
    %c0_11 = arith.constant 0 : index
    %26 = vector.load %arg4[%c0_10, %c0_11] : memref<32x96xf32, #tpu.memory_space<vmem>>, vector<32x96xf32>
    %cst_12 = arith.constant dense<0.000000e+00> : vector<5x96xf32>
    %27 = tpu.matmul %25, %26, %cst_12 {dimension_numbers = #tpu.dot_dimension_numbers<[1], [0], [0], [1], [0, 0, 1, 1], [], []>} : vector<5x32xf32>, vector<32x96xf32>, vector<5x96xf32> -> vector<5x96xf32>
    %c0_13 = arith.constant 0 : index
    %c0_14 = arith.constant 0 : index
    %28 = vector.load %arg5[%c0_13, %c0_14] : memref<1x96xf32, #tpu.memory_space<vmem>>, vector<1x96xf32>
    %29 = vector.broadcast %28 : vector<1x96xf32> to vector<5x96xf32>
    %30 = arith.addf %27, %29 : vector<5x96xf32>
    %c0_15 = arith.constant 0 : index
    %c0_16 = arith.constant 0 : index
    %31 = vector.load %arg6[%c0_15, %c0_16] : memref<32x32xf32, #tpu.memory_space<vmem>>, vector<32x32xf32>
    %cst_17 = arith.constant 0.000000e+00 : f32
    %32 = vector.broadcast %cst_17 : f32 to vector<5x32xf32>
    %33 = vector.extract_strided_slice %30 {offsets = [0, 0], sizes = [5, 8], strides = [1, 1]} : vector<5x96xf32> to vector<5x8xf32>
    %cst_18 = arith.constant 0.353553385 : f32
    %34 = vector.broadcast %cst_18 : f32 to vector<5x8xf32>
    %35 = arith.mulf %33, %34 : vector<5x8xf32>
    %36 = vector.extract_strided_slice %30 {offsets = [0, 32], sizes = [5, 8], strides = [1, 1]} : vector<5x96xf32> to vector<5x8xf32>
    %37 = vector.extract_strided_slice %30 {offsets = [0, 64], sizes = [5, 8], strides = [1, 1]} : vector<5x96xf32> to vector<5x8xf32>
    %38 = tpu.transpose %36, [1, 0] : vector<5x8xf32> -> vector<8x5xf32>
    %cst_19 = arith.constant dense<0.000000e+00> : vector<5x5xf32>
    %39 = tpu.matmul %35, %38, %cst_19 {dimension_numbers = #tpu.dot_dimension_numbers<[1], [0], [0], [1], [0, 0, 1, 1], [], []>} : vector<5x8xf32>, vector<8x5xf32>, vector<5x5xf32> -> vector<5x5xf32>
    %cst_20 = arith.constant dense<0xFF800000> : vector<5xf32>
    %40 = vector.multi_reduction <maximumf>, %39, %cst_20 [1] : vector<5x5xf32> to vector<5xf32>
    %41 = vector.shape_cast %40 : vector<5xf32> to vector<5x1xf32>
    %42 = vector.broadcast %41 : vector<5x1xf32> to vector<5x5xf32>
    %43 = arith.subf %39, %42 : vector<5x5xf32>
    %44 = math.exp %43 : vector<5x5xf32>
    %cst_21 = arith.constant dense<0.000000e+00> : vector<5xf32>
    %45 = vector.multi_reduction <add>, %44, %cst_21 [1] : vector<5x5xf32> to vector<5xf32>
    %46 = vector.shape_cast %45 : vector<5xf32> to vector<5x1xf32>
    %47 = tpu.reciprocal %46 {approx = true} : vector<5x1xf32> -> vector<5x1xf32>
    %cst_22 = arith.constant dense<0.000000e+00> : vector<5x8xf32>
    %48 = tpu.matmul %44, %37, %cst_22 {dimension_numbers = #tpu.dot_dimension_numbers<[1], [0], [0], [1], [0, 0, 1, 1], [], []>} : vector<5x5xf32>, vector<5x8xf32>, vector<5x8xf32> -> vector<5x8xf32>
    %49 = vector.broadcast %47 : vector<5x1xf32> to vector<5x8xf32>
    %50 = arith.mulf %48, %49 : vector<5x8xf32>
    %51 = vector.extract_strided_slice %31 {offsets = [0, 0], sizes = [8, 32], strides = [1, 1]} : vector<32x32xf32> to vector<8x32xf32>
    %cst_23 = arith.constant dense<0.000000e+00> : vector<5x32xf32>
    %52 = tpu.matmul %50, %51, %cst_23 {dimension_numbers = #tpu.dot_dimension_numbers<[1], [0], [0], [1], [0, 0, 1, 1], [], []>} : vector<5x8xf32>, vector<8x32xf32>, vector<5x32xf32> -> vector<5x32xf32>
    %53 = arith.addf %32, %52 : vector<5x32xf32>
    %54 = vector.extract_strided_slice %30 {offsets = [0, 8], sizes = [5, 8], strides = [1, 1]} : vector<5x96xf32> to vector<5x8xf32>
    %cst_24 = arith.constant 0.353553385 : f32
    %55 = vector.broadcast %cst_24 : f32 to vector<5x8xf32>
    %56 = arith.mulf %54, %55 : vector<5x8xf32>
    %57 = vector.extract_strided_slice %30 {offsets = [0, 40], sizes = [5, 8], strides = [1, 1]} : vector<5x96xf32> to vector<5x8xf32>
    %58 = vector.extract_strided_slice %30 {offsets = [0, 72], sizes = [5, 8], strides = [1, 1]} : vector<5x96xf32> to vector<5x8xf32>
    %59 = tpu.transpose %57, [1, 0] : vector<5x8xf32> -> vector<8x5xf32>
    %cst_25 = arith.constant dense<0.000000e+00> : vector<5x5xf32>
    %60 = tpu.matmul %56, %59, %cst_25 {dimension_numbers = #tpu.dot_dimension_numbers<[1], [0], [0], [1], [0, 0, 1, 1], [], []>} : vector<5x8xf32>, vector<8x5xf32>, vector<5x5xf32> -> vector<5x5xf32>
    %cst_26 = arith.constant dense<0xFF800000> : vector<5xf32>
    %61 = vector.multi_reduction <maximumf>, %60, %cst_26 [1] : vector<5x5xf32> to vector<5xf32>
    %62 = vector.shape_cast %61 : vector<5xf32> to vector<5x1xf32>
    %63 = vector.broadcast %62 : vector<5x1xf32> to vector<5x5xf32>
    %64 = arith.subf %60, %63 : vector<5x5xf32>
    %65 = math.exp %64 : vector<5x5xf32>
    %cst_27 = arith.constant dense<0.000000e+00> : vector<5xf32>
    %66 = vector.multi_reduction <add>, %65, %cst_27 [1] : vector<5x5xf32> to vector<5xf32>
    %67 = vector.shape_cast %66 : vector<5xf32> to vector<5x1xf32>
    %68 = tpu.reciprocal %67 {approx = true} : vector<5x1xf32> -> vector<5x1xf32>
    %cst_28 = arith.constant dense<0.000000e+00> : vector<5x8xf32>
    %69 = tpu.matmul %65, %58, %cst_28 {dimension_numbers = #tpu.dot_dimension_numbers<[1], [0], [0], [1], [0, 0, 1, 1], [], []>} : vector<5x5xf32>, vector<5x8xf32>, vector<5x8xf32> -> vector<5x8xf32>
    %70 = vector.broadcast %68 : vector<5x1xf32> to vector<5x8xf32>
    %71 = arith.mulf %69, %70 : vector<5x8xf32>
    %72 = vector.extract_strided_slice %31 {offsets = [8, 0], sizes = [8, 32], strides = [1, 1]} : vector<32x32xf32> to vector<8x32xf32>
    %cst_29 = arith.constant dense<0.000000e+00> : vector<5x32xf32>
    %73 = tpu.matmul %71, %72, %cst_29 {dimension_numbers = #tpu.dot_dimension_numbers<[1], [0], [0], [1], [0, 0, 1, 1], [], []>} : vector<5x8xf32>, vector<8x32xf32>, vector<5x32xf32> -> vector<5x32xf32>
    %74 = arith.addf %53, %73 : vector<5x32xf32>
    %75 = vector.extract_strided_slice %30 {offsets = [0, 16], sizes = [5, 8], strides = [1, 1]} : vector<5x96xf32> to vector<5x8xf32>
    %cst_30 = arith.constant 0.353553385 : f32
    %76 = vector.broadcast %cst_30 : f32 to vector<5x8xf32>
    %77 = arith.mulf %75, %76 : vector<5x8xf32>
    %78 = vector.extract_strided_slice %30 {offsets = [0, 48], sizes = [5, 8], strides = [1, 1]} : vector<5x96xf32> to vector<5x8xf32>
    %79 = vector.extract_strided_slice %30 {offsets = [0, 80], sizes = [5, 8], strides = [1, 1]} : vector<5x96xf32> to vector<5x8xf32>
    %80 = tpu.transpose %78, [1, 0] : vector<5x8xf32> -> vector<8x5xf32>
    %cst_31 = arith.constant dense<0.000000e+00> : vector<5x5xf32>
    %81 = tpu.matmul %77, %80, %cst_31 {dimension_numbers = #tpu.dot_dimension_numbers<[1], [0], [0], [1], [0, 0, 1, 1], [], []>} : vector<5x8xf32>, vector<8x5xf32>, vector<5x5xf32> -> vector<5x5xf32>
    %cst_32 = arith.constant dense<0xFF800000> : vector<5xf32>
    %82 = vector.multi_reduction <maximumf>, %81, %cst_32 [1] : vector<5x5xf32> to vector<5xf32>
    %83 = vector.shape_cast %82 : vector<5xf32> to vector<5x1xf32>
    %84 = vector.broadcast %83 : vector<5x1xf32> to vector<5x5xf32>
    %85 = arith.subf %81, %84 : vector<5x5xf32>
    %86 = math.exp %85 : vector<5x5xf32>
    %cst_33 = arith.constant dense<0.000000e+00> : vector<5xf32>
    %87 = vector.multi_reduction <add>, %86, %cst_33 [1] : vector<5x5xf32> to vector<5xf32>
    %88 = vector.shape_cast %87 : vector<5xf32> to vector<5x1xf32>
    %89 = tpu.reciprocal %88 {approx = true} : vector<5x1xf32> -> vector<5x1xf32>
    %cst_34 = arith.constant dense<0.000000e+00> : vector<5x8xf32>
    %90 = tpu.matmul %86, %79, %cst_34 {dimension_numbers = #tpu.dot_dimension_numbers<[1], [0], [0], [1], [0, 0, 1, 1], [], []>} : vector<5x5xf32>, vector<5x8xf32>, vector<5x8xf32> -> vector<5x8xf32>
    %91 = vector.broadcast %89 : vector<5x1xf32> to vector<5x8xf32>
    %92 = arith.mulf %90, %91 : vector<5x8xf32>
    %93 = vector.extract_strided_slice %31 {offsets = [16, 0], sizes = [8, 32], strides = [1, 1]} : vector<32x32xf32> to vector<8x32xf32>
    %cst_35 = arith.constant dense<0.000000e+00> : vector<5x32xf32>
    %94 = tpu.matmul %92, %93, %cst_35 {dimension_numbers = #tpu.dot_dimension_numbers<[1], [0], [0], [1], [0, 0, 1, 1], [], []>} : vector<5x8xf32>, vector<8x32xf32>, vector<5x32xf32> -> vector<5x32xf32>
    %95 = arith.addf %74, %94 : vector<5x32xf32>
    %96 = vector.extract_strided_slice %30 {offsets = [0, 24], sizes = [5, 8], strides = [1, 1]} : vector<5x96xf32> to vector<5x8xf32>
    %cst_36 = arith.constant 0.353553385 : f32
    %97 = vector.broadcast %cst_36 : f32 to vector<5x8xf32>
    %98 = arith.mulf %96, %97 : vector<5x8xf32>
    %99 = vector.extract_strided_slice %30 {offsets = [0, 56], sizes = [5, 8], strides = [1, 1]} : vector<5x96xf32> to vector<5x8xf32>
    %100 = vector.extract_strided_slice %30 {offsets = [0, 88], sizes = [5, 8], strides = [1, 1]} : vector<5x96xf32> to vector<5x8xf32>
    %101 = tpu.transpose %99, [1, 0] : vector<5x8xf32> -> vector<8x5xf32>
    %cst_37 = arith.constant dense<0.000000e+00> : vector<5x5xf32>
    %102 = tpu.matmul %98, %101, %cst_37 {dimension_numbers = #tpu.dot_dimension_numbers<[1], [0], [0], [1], [0, 0, 1, 1], [], []>} : vector<5x8xf32>, vector<8x5xf32>, vector<5x5xf32> -> vector<5x5xf32>
    %cst_38 = arith.constant dense<0xFF800000> : vector<5xf32>
    %103 = vector.multi_reduction <maximumf>, %102, %cst_38 [1] : vector<5x5xf32> to vector<5xf32>
    %104 = vector.shape_cast %103 : vector<5xf32> to vector<5x1xf32>
    %105 = vector.broadcast %104 : vector<5x1xf32> to vector<5x5xf32>
    %106 = arith.subf %102, %105 : vector<5x5xf32>
    %107 = math.exp %106 : vector<5x5xf32>
    %cst_39 = arith.constant dense<0.000000e+00> : vector<5xf32>
    %108 = vector.multi_reduction <add>, %107, %cst_39 [1] : vector<5x5xf32> to vector<5xf32>
    %109 = vector.shape_cast %108 : vector<5xf32> to vector<5x1xf32>
    %110 = tpu.reciprocal %109 {approx = true} : vector<5x1xf32> -> vector<5x1xf32>
    %cst_40 = arith.constant dense<0.000000e+00> : vector<5x8xf32>
    %111 = tpu.matmul %107, %100, %cst_40 {dimension_numbers = #tpu.dot_dimension_numbers<[1], [0], [0], [1], [0, 0, 1, 1], [], []>} : vector<5x5xf32>, vector<5x8xf32>, vector<5x8xf32> -> vector<5x8xf32>
    %112 = vector.broadcast %110 : vector<5x1xf32> to vector<5x8xf32>
    %113 = arith.mulf %111, %112 : vector<5x8xf32>
    %114 = vector.extract_strided_slice %31 {offsets = [24, 0], sizes = [8, 32], strides = [1, 1]} : vector<32x32xf32> to vector<8x32xf32>
    %cst_41 = arith.constant dense<0.000000e+00> : vector<5x32xf32>
    %115 = tpu.matmul %113, %114, %cst_41 {dimension_numbers = #tpu.dot_dimension_numbers<[1], [0], [0], [1], [0, 0, 1, 1], [], []>} : vector<5x8xf32>, vector<8x32xf32>, vector<5x32xf32> -> vector<5x32xf32>
    %116 = arith.addf %95, %115 : vector<5x32xf32>
    %117 = arith.addf %1, %116 : vector<5x32xf32>
    %c0_42 = arith.constant 0 : index
    %c0_43 = arith.constant 0 : index
    %118 = vector.load %arg7[%c0_42, %c0_43] : memref<1x32xf32, #tpu.memory_space<vmem>>, vector<1x32xf32>
    %119 = vector.broadcast %118 : vector<1x32xf32> to vector<5x32xf32>
    %120 = arith.addf %117, %119 : vector<5x32xf32>
    %c0_44 = arith.constant 0 : index
    %c0_45 = arith.constant 0 : index
    %121 = vector.load %arg8[%c0_44, %c0_45] : memref<1x32xf32, #tpu.memory_space<vmem>>, vector<1x32xf32>
    %c0_46 = arith.constant 0 : index
    %c0_47 = arith.constant 0 : index
    %122 = vector.load %arg9[%c0_46, %c0_47] : memref<1x32xf32, #tpu.memory_space<vmem>>, vector<1x32xf32>
    %cst_48 = arith.constant dense<0.000000e+00> : vector<5xf32>
    %123 = vector.multi_reduction <add>, %120, %cst_48 [1] : vector<5x32xf32> to vector<5xf32>
    %124 = vector.shape_cast %123 : vector<5xf32> to vector<5x1xf32>
    %cst_49 = arith.constant 3.200000e+01 : f32
    %125 = vector.broadcast %cst_49 : f32 to vector<5x1xf32>
    %126 = arith.divf %124, %125 : vector<5x1xf32>
    %127 = vector.broadcast %126 : vector<5x1xf32> to vector<5x32xf32>
    %128 = arith.subf %120, %127 : vector<5x32xf32>
    %129 = arith.mulf %128, %128 : vector<5x32xf32>
    %cst_50 = arith.constant dense<0.000000e+00> : vector<5xf32>
    %130 = vector.multi_reduction <add>, %129, %cst_50 [1] : vector<5x32xf32> to vector<5xf32>
    %131 = vector.shape_cast %130 : vector<5xf32> to vector<5x1xf32>
    %cst_51 = arith.constant 3.200000e+01 : f32
    %132 = vector.broadcast %cst_51 : f32 to vector<5x1xf32>
    %133 = arith.divf %131, %132 : vector<5x1xf32>
    %134 = vector.broadcast %126 : vector<5x1xf32> to vector<5x32xf32>
    %135 = arith.subf %120, %134 : vector<5x32xf32>
    %cst_52 = arith.constant 9.99999997E-7 : f32
    %136 = vector.broadcast %cst_52 : f32 to vector<5x1xf32>
    %137 = arith.addf %133, %136 : vector<5x1xf32>
    %138 = math.rsqrt %137 : vector<5x1xf32>
    %139 = vector.broadcast %138 : vector<5x1xf32> to vector<5x32xf32>
    %140 = arith.mulf %135, %139 : vector<5x32xf32>
    %141 = vector.broadcast %121 : vector<1x32xf32> to vector<5x32xf32>
    %142 = arith.mulf %140, %141 : vector<5x32xf32>
    %143 = vector.broadcast %122 : vector<1x32xf32> to vector<5x32xf32>
    %144 = arith.addf %142, %143 : vector<5x32xf32>
    %c0_53 = arith.constant 0 : index
    %c0_54 = arith.constant 0 : index
    %145 = vector.load %arg10[%c0_53, %c0_54] : memref<32x64xf32, #tpu.memory_space<vmem>>, vector<32x64xf32>
    %cst_55 = arith.constant dense<0.000000e+00> : vector<5x64xf32>
    %146 = tpu.matmul %144, %145, %cst_55 {dimension_numbers = #tpu.dot_dimension_numbers<[1], [0], [0], [1], [0, 0, 1, 1], [], []>} : vector<5x32xf32>, vector<32x64xf32>, vector<5x64xf32> -> vector<5x64xf32>
    %c0_56 = arith.constant 0 : index
    %c0_57 = arith.constant 0 : index
    %147 = vector.load %arg11[%c0_56, %c0_57] : memref<1x64xf32, #tpu.memory_space<vmem>>, vector<1x64xf32>
    %148 = vector.broadcast %147 : vector<1x64xf32> to vector<5x64xf32>
    %149 = arith.addf %146, %148 : vector<5x64xf32>
    %150 = arith.mulf %149, %149 : vector<5x64xf32>
    %151 = arith.mulf %149, %150 : vector<5x64xf32>
    %cst_58 = arith.constant 4.471500e-02 : f32
    %152 = vector.broadcast %cst_58 : f32 to vector<5x64xf32>
    %153 = arith.mulf %152, %151 : vector<5x64xf32>
    %154 = arith.addf %149, %153 : vector<5x64xf32>
    %cst_59 = arith.constant 0.797884583 : f32
    %155 = vector.broadcast %cst_59 : f32 to vector<5x64xf32>
    %156 = arith.mulf %155, %154 : vector<5x64xf32>
    %157 = math.tanh %156 : vector<5x64xf32>
    %cst_60 = arith.constant 1.000000e+00 : f32
    %158 = vector.broadcast %cst_60 : f32 to vector<5x64xf32>
    %159 = arith.addf %158, %157 : vector<5x64xf32>
    %cst_61 = arith.constant 5.000000e-01 : f32
    %160 = vector.broadcast %cst_61 : f32 to vector<5x64xf32>
    %161 = arith.mulf %160, %159 : vector<5x64xf32>
    %162 = arith.mulf %149, %161 : vector<5x64xf32>
    %c0_62 = arith.constant 0 : index
    %c0_63 = arith.constant 0 : index
    %163 = vector.load %arg12[%c0_62, %c0_63] : memref<64x32xf32, #tpu.memory_space<vmem>>, vector<64x32xf32>
    %cst_64 = arith.constant dense<0.000000e+00> : vector<5x32xf32>
    %164 = tpu.matmul %162, %163, %cst_64 {dimension_numbers = #tpu.dot_dimension_numbers<[1], [0], [0], [1], [0, 0, 1, 1], [], []>} : vector<5x64xf32>, vector<64x32xf32>, vector<5x32xf32> -> vector<5x32xf32>
    %c0_65 = arith.constant 0 : index
    %c0_66 = arith.constant 0 : index
    %165 = vector.load %arg13[%c0_65, %c0_66] : memref<1x32xf32, #tpu.memory_space<vmem>>, vector<1x32xf32>
    %166 = vector.broadcast %165 : vector<1x32xf32> to vector<5x32xf32>
    %167 = arith.addf %164, %166 : vector<5x32xf32>
    %168 = arith.addf %120, %167 : vector<5x32xf32>
    %c0_67 = arith.constant 0 : index
    %c0_68 = arith.constant 0 : index
    %c0_69 = arith.constant 0 : index
    %169 = vector.load %arg14[%c0_67, %c0_68, %c0_69] : memref<1x5x32xf32, #tpu.memory_space<vmem>>, vector<1x5x32xf32>
    %170 = vector.shape_cast %169 : vector<1x5x32xf32> to vector<5x32xf32>
    %171 = vector.shape_cast %168 : vector<5x32xf32> to vector<1x5x32xf32>
    tpu.vector_store %arg14[%c0_67, %c0_68, %c0_69], %171 {strides = array<i32>} : memref<1x5x32xf32, #tpu.memory_space<vmem>>, vector<1x5x32xf32>,
    return
  }
  func.func @transform_0(%arg0: i32) -> (i32, i32, i32) {
    %c0_i32 = arith.constant 0 : i32
    %c0_i32_0 = arith.constant 0 : i32
    %c0_i32_1 = arith.constant 0 : i32
    return %arg0, %c0_i32, %c0_i32_0 : i32, i32, i32
  }
  func.func @transform_1(%arg0: i32) -> (i32, i32) {
    %c0_i32 = arith.constant 0 : i32
    %c0_i32_0 = arith.constant 0 : i32
    %c0_i32_1 = arith.constant 0 : i32
    return %c0_i32, %c0_i32_0 : i32, i32
  }
  func.func @transform_2(%arg0: i32) -> (i32, i32) {
    %c0_i32 = arith.constant 0 : i32
    %c0_i32_0 = arith.constant 0 : i32
    %c0_i32_1 = arith.constant 0 : i32
    return %c0_i32, %c0_i32_0 : i32, i32
  }
  func.func @transform_3(%arg0: i32) -> (i32, i32) {
    %c0_i32 = arith.constant 0 : i32
    %c0_i32_0 = arith.constant 0 : i32
    %c0_i32_1 = arith.constant 0 : i32
    return %c0_i32, %c0_i32_0 : i32, i32
  }
  func.func @transform_4(%arg0: i32) -> (i32, i32) {
    %c0_i32 = arith.constant 0 : i32
    %c0_i32_0 = arith.constant 0 : i32
    %c0_i32_1 = arith.constant 0 : i32
    return %c0_i32, %c0_i32_0 : i32, i32
  }
  func.func @transform_5(%arg0: i32) -> (i32, i32) {
    %c0_i32 = arith.constant 0 : i32
    %c0_i32_0 = arith.constant 0 : i32
    %c0_i32_1 = arith.constant 0 : i32
    return %c0_i32, %c0_i32_0 : i32, i32
  }
  func.func @transform_6(%arg0: i32) -> (i32, i32) {
    %c0_i32 = arith.constant 0 : i32
    %c0_i32_0 = arith.constant 0 : i32
    %c0_i32_1 = arith.constant 0 : i32
    return %c0_i32, %c0_i32_0 : i32, i32
  }
  func.func @transform_7(%arg0: i32) -> (i32, i32) {
    %c0_i32 = arith.constant 0 : i32
    %c0_i32_0 = arith.constant 0 : i32
    %c0_i32_1 = arith.constant 0 : i32
    return %c0_i32, %c0_i32_0 : i32, i32
  }
  func.func @transform_8(%arg0: i32) -> (i32, i32) {
    %c0_i32 = arith.constant 0 : i32
    %c0_i32_0 = arith.constant 0 : i32
    %c0_i32_1 = arith.constant 0 : i32
    return %c0_i32, %c0_i32_0 : i32, i32
  }
  func.func @transform_9(%arg0: i32) -> (i32, i32) {
    %c0_i32 = arith.constant 0 : i32
    %c0_i32_0 = arith.constant 0 : i32
    %c0_i32_1 = arith.constant 0 : i32
    return %c0_i32, %c0_i32_0 : i32, i32
  }
  func.func @transform_10(%arg0: i32) -> (i32, i32) {
    %c0_i32 = arith.constant 0 : i32
    %c0_i32_0 = arith.constant 0 : i32
    %c0_i32_1 = arith.constant 0 : i32
    return %c0_i32, %c0_i32_0 : i32, i32
  }
  func.func @transform_11(%arg0: i32) -> (i32, i32) {
    %c0_i32 = arith.constant 0 : i32
    %c0_i32_0 = arith.constant 0 : i32
    %c0_i32_1 = arith.constant 0 : i32
    return %c0_i32, %c0_i32_0 : i32, i32
  }
  func.func @transform_12(%arg0: i32) -> (i32, i32) {
    %c0_i32 = arith.constant 0 : i32
    %c0_i32_0 = arith.constant 0 : i32
    %c0_i32_1 = arith.constant 0 : i32
    return %c0_i32, %c0_i32_0 : i32, i32
  }
  func.func @transform_13(%arg0: i32) -> (i32, i32, i32) {
    %c0_i32 = arith.constant 0 : i32
    %c0_i32_0 = arith.constant 0 : i32
    %c0_i32_1 = arith.constant 0 : i32
    return %arg0, %c0_i32, %c0_i32_0 : i32, i32, i32
  }
}

module attributes {stable_mosaic.version = 11 : i64} {
  func.func @_head_kernel(%arg0: i32, %arg1: memref<2x5x32xf32, #tpu.memory_space<vmem>>, %arg2: memref<1x32xf32, #tpu.memory_space<vmem>>, %arg3: memref<1x32xf32, #tpu.memory_space<vmem>>, %arg4: memref<32x128xf32, #tpu.memory_space<vmem>>, %arg5: memref<1x128xf32, #tpu.memory_space<vmem>>, %arg6: memref<2x32xf32, #tpu.memory_space<vmem>>, %arg7: memref<2x128xf32, #tpu.memory_space<vmem>>) attributes {dimension_semantics = [#tpu.dimension_semantics<arbitrary>], iteration_bounds = array<i64: 1>, scalar_prefetch = 0 : i64, scratch_operands = 0 : i64, tpu.core_type = #tpu.core_type<tc>, window_params = [{pipeline_mode = #tpu.pipeline_mode<synchronous>, transform_indices = @transform_0, window_bounds = array<i64: 2, 5, 32>}, {pipeline_mode = #tpu.pipeline_mode<synchronous>, transform_indices = @transform_1, window_bounds = array<i64: 1, 32>}, {pipeline_mode = #tpu.pipeline_mode<synchronous>, transform_indices = @transform_2, window_bounds = array<i64: 1, 32>}, {pipeline_mode = #tpu.pipeline_mode<synchronous>, transform_indices = @transform_3, window_bounds = array<i64: 32, 128>}, {pipeline_mode = #tpu.pipeline_mode<synchronous>, transform_indices = @transform_4, window_bounds = array<i64: 1, 128>}, {pipeline_mode = #tpu.pipeline_mode<synchronous>, transform_indices = @transform_5, window_bounds = array<i64: 2, 32>}, {pipeline_mode = #tpu.pipeline_mode<synchronous>, transform_indices = @transform_6, window_bounds = array<i64: 2, 128>}]} {
    %c0 = arith.constant 0 : index
    %c0_0 = arith.constant 0 : index
    %c0_1 = arith.constant 0 : index
    %0 = vector.load %arg1[%c0, %c0_0, %c0_1] : memref<2x5x32xf32, #tpu.memory_space<vmem>>, vector<2x5x32xf32>
    %1 = vector.extract_strided_slice %0 {offsets = [0, 1, 0], sizes = [2, 4, 32], strides = [1, 1, 1]} : vector<2x5x32xf32> to vector<2x4x32xf32>
    %cst = arith.constant dense<0.000000e+00> : vector<2x32xf32>
    %2 = vector.multi_reduction <add>, %1, %cst [1] : vector<2x4x32xf32> to vector<2x32xf32>
    %cst_2 = arith.constant 4.000000e+00 : f32
    %3 = vector.broadcast %cst_2 : f32 to vector<2x32xf32>
    %4 = arith.divf %2, %3 : vector<2x32xf32>
    %c0_3 = arith.constant 0 : index
    %c0_4 = arith.constant 0 : index
    %5 = vector.load %arg2[%c0_3, %c0_4] : memref<1x32xf32, #tpu.memory_space<vmem>>, vector<1x32xf32>
    %c0_5 = arith.constant 0 : index
    %c0_6 = arith.constant 0 : index
    %6 = vector.load %arg3[%c0_5, %c0_6] : memref<1x32xf32, #tpu.memory_space<vmem>>, vector<1x32xf32>
    %cst_7 = arith.constant dense<0.000000e+00> : vector<2xf32>
    %7 = vector.multi_reduction <add>, %4, %cst_7 [1] : vector<2x32xf32> to vector<2xf32>
    %8 = vector.shape_cast %7 : vector<2xf32> to vector<2x1xf32>
    %cst_8 = arith.constant 3.200000e+01 : f32
    %9 = vector.broadcast %cst_8 : f32 to vector<2x1xf32>
    %10 = arith.divf %8, %9 : vector<2x1xf32>
    %11 = vector.broadcast %10 : vector<2x1xf32> to vector<2x32xf32>
    %12 = arith.subf %4, %11 : vector<2x32xf32>
    %13 = arith.mulf %12, %12 : vector<2x32xf32>
    %cst_9 = arith.constant dense<0.000000e+00> : vector<2xf32>
    %14 = vector.multi_reduction <add>, %13, %cst_9 [1] : vector<2x32xf32> to vector<2xf32>
    %15 = vector.shape_cast %14 : vector<2xf32> to vector<2x1xf32>
    %cst_10 = arith.constant 3.200000e+01 : f32
    %16 = vector.broadcast %cst_10 : f32 to vector<2x1xf32>
    %17 = arith.divf %15, %16 : vector<2x1xf32>
    %18 = vector.broadcast %10 : vector<2x1xf32> to vector<2x32xf32>
    %19 = arith.subf %4, %18 : vector<2x32xf32>
    %cst_11 = arith.constant 9.99999997E-7 : f32
    %20 = vector.broadcast %cst_11 : f32 to vector<2x1xf32>
    %21 = arith.addf %17, %20 : vector<2x1xf32>
    %22 = math.rsqrt %21 : vector<2x1xf32>
    %23 = vector.broadcast %22 : vector<2x1xf32> to vector<2x32xf32>
    %24 = arith.mulf %19, %23 : vector<2x32xf32>
    %25 = vector.broadcast %5 : vector<1x32xf32> to vector<2x32xf32>
    %26 = arith.mulf %24, %25 : vector<2x32xf32>
    %27 = vector.broadcast %6 : vector<1x32xf32> to vector<2x32xf32>
    %28 = arith.addf %26, %27 : vector<2x32xf32>
    %c0_12 = arith.constant 0 : index
    %c0_13 = arith.constant 0 : index
    %29 = vector.load %arg6[%c0_12, %c0_13] : memref<2x32xf32, #tpu.memory_space<vmem>>, vector<2x32xf32>
    tpu.vector_store %arg6[%c0_12, %c0_13], %28 {strides = array<i32>} : memref<2x32xf32, #tpu.memory_space<vmem>>, vector<2x32xf32>,
    %c0_14 = arith.constant 0 : index
    %c0_15 = arith.constant 0 : index
    %30 = vector.load %arg4[%c0_14, %c0_15] : memref<32x128xf32, #tpu.memory_space<vmem>>, vector<32x128xf32>
    %cst_16 = arith.constant dense<0.000000e+00> : vector<2x128xf32>
    %31 = tpu.matmul %28, %30, %cst_16 {dimension_numbers = #tpu.dot_dimension_numbers<[1], [0], [0], [1], [0, 0, 1, 1], [], []>} : vector<2x32xf32>, vector<32x128xf32>, vector<2x128xf32> -> vector<2x128xf32>
    %c0_17 = arith.constant 0 : index
    %c0_18 = arith.constant 0 : index
    %32 = vector.load %arg5[%c0_17, %c0_18] : memref<1x128xf32, #tpu.memory_space<vmem>>, vector<1x128xf32>
    %33 = vector.broadcast %32 : vector<1x128xf32> to vector<2x128xf32>
    %34 = arith.addf %31, %33 : vector<2x128xf32>
    %c0_19 = arith.constant 0 : index
    %c0_20 = arith.constant 0 : index
    %35 = vector.load %arg7[%c0_19, %c0_20] : memref<2x128xf32, #tpu.memory_space<vmem>>, vector<2x128xf32>
    tpu.vector_store %arg7[%c0_19, %c0_20], %34 {strides = array<i32>} : memref<2x128xf32, #tpu.memory_space<vmem>>, vector<2x128xf32>,
    return
  }
  func.func @transform_0(%arg0: i32) -> (i32, i32, i32) {
    %c0_i32 = arith.constant 0 : i32
    %c0_i32_0 = arith.constant 0 : i32
    %c0_i32_1 = arith.constant 0 : i32
    %c0_i32_2 = arith.constant 0 : i32
    return %c0_i32, %c0_i32_0, %c0_i32_1 : i32, i32, i32
  }
  func.func @transform_1(%arg0: i32) -> (i32, i32) {
    %c0_i32 = arith.constant 0 : i32
    %c0_i32_0 = arith.constant 0 : i32
    %c0_i32_1 = arith.constant 0 : i32
    return %c0_i32, %c0_i32_0 : i32, i32
  }
  func.func @transform_2(%arg0: i32) -> (i32, i32) {
    %c0_i32 = arith.constant 0 : i32
    %c0_i32_0 = arith.constant 0 : i32
    %c0_i32_1 = arith.constant 0 : i32
    return %c0_i32, %c0_i32_0 : i32, i32
  }
  func.func @transform_3(%arg0: i32) -> (i32, i32) {
    %c0_i32 = arith.constant 0 : i32
    %c0_i32_0 = arith.constant 0 : i32
    %c0_i32_1 = arith.constant 0 : i32
    return %c0_i32, %c0_i32_0 : i32, i32
  }
  func.func @transform_4(%arg0: i32) -> (i32, i32) {
    %c0_i32 = arith.constant 0 : i32
    %c0_i32_0 = arith.constant 0 : i32
    %c0_i32_1 = arith.constant 0 : i32
    return %c0_i32, %c0_i32_0 : i32, i32
  }
  func.func @transform_5(%arg0: i32) -> (i32, i32) {
    %c0_i32 = arith.constant 0 : i32
    %c0_i32_0 = arith.constant 0 : i32
    %c0_i32_1 = arith.constant 0 : i32
    return %c0_i32, %c0_i32_0 : i32, i32
  }
  func.func @transform_6(%arg0: i32) -> (i32, i32) {
    %c0_i32 = arith.constant 0 : i32
    %c0_i32_0 = arith.constant 0 : i32
    %c0_i32_1 = arith.constant 0 : i32
    return %c0_i32, %c0_i32_0 : i32, i32
  }
}

</mosaic_0001>

<bundles_post_ra>
// kernel: eva_forward.4
= control target key start
LH: loop header
LB: loop body
LE: loop exit
PB: predicated region body
PF: predicated region fallthrough
CT: control target
= control target key end

     0   :  { %s551_s18 = smov 0   ;;  %s813_s0 = inlined_call_operand.vmem [shape: f32[2,4,588], index: 0, kind: input, shape index: {}]   ;;  %s814_s1 = inlined_call_operand.vmem [shape: f32[588,32], index: 1, kind: input, shape index: {}]   ;;  %s815_s2 = inlined_call_operand.vmem [shape: f32[1,32], index: 2, kind: input, shape index: {}]   ;;  %s816_s3 = inlined_call_operand.vmem [shape: f32[1,32], index: 3, kind: input, shape index: {}]   ;;  %s817_s4 = inlined_call_operand.vmem [shape: f32[5,32], index: 4, kind: input, shape index: {}]   ;;  %s818_s5 = inlined_call_operand.vmem [shape: f32[2,5,32], index: 5, kind: output, shape index: {}]  }
   0x1 LB: > { %s492_s19 = sadd.s32 4294967295, %s519_s18   ;;  %p496_p0 = scmp.ge.s32.totalorder %s519_s18, 1  ;;  %s519_s18 = sphi %s551_s18, %s15_s18  }
   0x2   : > { %p187_p1 = scmp.lt.s32.totalorder %s519_s18, 3 }
   0x4   : > { %p188_p2 = pnand %p496_p0, %p187_p1 }
   0x5   : > { %p615_p3 = scmp.lt.s32.totalorder (!%p188_p2), %s492_s19, 1 }
   0x6   : > { %191 = sbr.rel (%p188_p2) target bundleno = 194 (0xc2), region = 40 }
   0xb   : > { %v242_v0 = vld [vmem:[%s814_s1 + $0x78] sm:$0xff]  ;;  %v241_v1 = vld [vmem:[%s814_s1 + $0x70] sm:$0xff]  ;;  %v240_v3 = vld [vmem:[%s814_s1 + $0x68] sm:$0xff]  ;;  %s821_s19 = smov (!%p615_p3, %s492_s19), 1  ;;  %vm325_vm0 = vcmask 1043456   ;;  %vm322_vm1 = vcmask 621568  }
   0xc   : > { %329 = vmatpush.msra.mxu0 %v242_v0  ;;  %v274_v2 = vld [vmem:[%s814_s1 + $0x178] sm:$0xff]  ;;  %v273_v4 = vld [vmem:[%s814_s1 + $0x170] sm:$0xff]  ;;  %v272_v7 = vld [vmem:[%s814_s1 + $0x168] sm:$0xff]  ;;  %s503_s20 = smul.u32 20, %s821_s19  ;;  %s498_s10 = sshll.u32 %s821_s19, 3  ;;  %vm435_vm2 = vcmask 253952  }
   0xd   : > { %369 = vmatpush.msra.mxu2 %v274_v2  ;;  %v290_v5 = vld [vmem:[%s814_s1 + $0x1f8] sm:$0xff]  ;;  %v239_v8 = vld [vmem:[%s814_s1 + $0x60] sm:$0xff]  ;;  %v289_v9 = vld [vmem:[%s814_s1 + $0x1f0] sm:$0xff]  ;;  %s222_s13 = scalar_lea.vmem %s818_s5, %s498_s10  ;;  %vm437_vm3 = vcmask 257024  }
   0xe   : > { %330 = vmatpush.msra.mxu0 %v241_v1  ;;  %389 = vmatpush.msra.mxu3 %v290_v5  ;;  %v258_v6 = vld [vmem:[%s814_s1 + $0xf8] sm:$0xff]  ;;  %v257_v10 = vld [vmem:[%s814_s1 + $0xf0] sm:$0xff]  ;;  %v271_v11 = vld [vmem:[%s814_s1 + $0x160] sm:$0xff]  ;;  %s218_s14 = scalar_lea.vmem %s813_s0, %s503_s20 }
   0xf   : > { %370 = vmatpush.msra.mxu2 %v273_v4  ;;  %349 = vmatpush.msra.mxu1 %v258_v6  ;;  %v288_v12 = vld [vmem:[%s814_s1 + $0x1e8] sm:$0xff]  ;;  %v238_v13 = vld [vmem:[%s814_s1 + $0x58] sm:$0xff]  ;;  %v287_v15 = vld [vmem:[%s814_s1 + $0x1e0] sm:$0xff] }
  0x10   : > { %331 = vmatpush.msra.mxu0 %v240_v3  ;;  %390 = vmatpush.msra.mxu3 %v289_v9  ;;  %v256_v14 = vld [vmem:[%s814_s1 + $0xe8] sm:$0xff]  ;;  %v270_v16 = vld [vmem:[%s814_s1 + $0x158] sm:$0xff]  ;;  %v255_v17 = vld [vmem:[%s814_s1 + $0xe0] sm:$0xff] }
  0x11   : > { %371 = vmatpush.msra.mxu2 %v272_v7  ;;  %350 = vmatpush.msra.mxu1 %v257_v10  ;;  %v237_v18 = vld [vmem:[%s814_s1 + $0x50] sm:$0xff]  ;;  %v286_v19 = vld [vmem:[%s814_s1 + $0x1d8] sm:$0xff]  ;;  %v236_v22 = vld [vmem:[%s814_s1 + $0x48] sm:$0xff] }
  0x12   : > { %332 = vmatpush.msra.mxu0 %v239_v8  ;;  %391 = vmatpush.msra.mxu3 %v288_v12  ;;  %v269_v20 = vld [vmem:[%s814_s1 + $0x150] sm:$0xff]  ;;  %v254_v21 = vld [vmem:[%s814_s1 + $0xd8] sm:$0xff]  ;;  %v268_v24 = vld [vmem:[%s814_s1 + $0x148] sm:$0xff] }
  0x13   : > { %372 = vmatpush.msra.mxu2 %v271_v11  ;;  %351 = vmatpush.msra.mxu1 %v256_v14  ;;  %v285_v23 = vld [vmem:[%s814_s1 + $0x1d0] sm:$0xff]  ;;  %v235_v26 = vld [vmem:[%s814_s1 + $0x40] sm:$0xff]  ;;  %v284_v27 = vld [vmem:[%s814_s1 + $0x1c8] sm:$0xff] }
  0x14   : > { %333 = vmatpush.msra.mxu0 %v238_v13  ;;  %392 = vmatpush.msra.mxu3 %v287_v15  ;;  %v253_v25 = vld [vmem:[%s814_s1 + $0xd0] sm:$0xff]  ;;  %v267_v28 = vld [vmem:[%s814_s1 + $0x140] sm:$0xff]  ;;  %v252_v29 = vld [vmem:[%s814_s1 + $0xc8] sm:$0xff] }
  0x15   : > { %373 = vmatpush.msra.mxu2 %v270_v16  ;;  %352 = vmatpush.msra.mxu1 %v255_v17  ;;  %v234_v30 = vld [vmem:[%s814_s1 + $0x38] sm:$0xff]  ;;  %v283_v31 = vld [vmem:[%s814_s1 + $0x1c0] sm:$0xff]  ;;  %v233_v34 = vld [vmem:[%s814_s1 + $0x30] sm:$0xff] }
  0x16   : > { %334 = vmatpush.msra.mxu0 %v237_v18  ;;  %393 = vmatpush.msra.mxu3 %v286_v19  ;;  %v266_v32 = vld [vmem:[%s814_s1 + $0x138] sm:$0xff]  ;;  %v251_v33 = vld [vmem:[%s814_s1 + $0xc0] sm:$0xff]  ;;  %v265_v36 = vld [vmem:[%s814_s1 + $0x130] sm:$0xff] }
  0x17   : > { %374 = vmatpush.msra.mxu2 %v269_v20  ;;  %353 = vmatpush.msra.mxu1 %v254_v21  ;;  %v282_v35 = vld [vmem:[%s814_s1 + $0x1b8] sm:$0xff]  ;;  %v232_v38 = vld [vmem:[%s814_s1 + $0x28] sm:$0xff]  ;;  %v281_v39 = vld [vmem:[%s814_s1 + $0x1b0] sm:$0xff] }
  0x18   : > { %335 = vmatpush.msra.mxu0 %v236_v22  ;;  %394 = vmatpush.msra.mxu3 %v285_v23  ;;  %v250_v37 = vld [vmem:[%s814_s1 + $0xb8] sm:$0xff]  ;;  %v264_v40 = vld [vmem:[%s814_s1 + $0x128] sm:$0xff]  ;;  %v249_v41 = vld [vmem:[%s814_s1 + $0xb0] sm:$0xff] }
  0x19   : > { %375 = vmatpush.msra.mxu2 %v268_v24  ;;  %354 = vmatpush.msra.mxu1 %v253_v25  ;;  %v231_v42 = vld [vmem:[%s814_s1 + $0x20] sm:$0xff]  ;;  %v280_v43 = vld [vmem:[%s814_s1 + $0x1a8] sm:$0xff]  ;;  %v230_v46 = vld [vmem:[%s814_s1 + $0x18] sm:$0xff] }
  0x1a   : > { %336 = vmatpush.msra.mxu0 %v235_v26  ;;  %395 = vmatpush.msra.mxu3 %v284_v27  ;;  %v263_v44 = vld [vmem:[%s814_s1 + $0x120] sm:$0xff]  ;;  %v248_v45 = vld [vmem:[%s814_s1 + $0xa8] sm:$0xff]  ;;  %v262_v49 = vld [vmem:[%s814_s1 + $0x118] sm:$0xff] }
  0x1b   : > { %376 = vmatpush.msra.mxu2 %v267_v28  ;;  %355 = vmatpush.msra.mxu1 %v252_v29  ;;  %v279_v47 = vld [vmem:[%s814_s1 + $0x1a0] sm:$0xff]  ;;  %v224_v48 = vld [vmem:[%s218_s14 + $0x8] sm:$0xff]  ;;  %v229_v52 = vld [vmem:[%s814_s1 + $0x10] sm:$0xff] }
  0x1c   : > { %337 = vmatpush.msra.mxu0 %v234_v30  ;;  %396 = vmatpush.msra.mxu3 %v283_v31  ;;  %v247_v50 = vld [vmem:[%s814_s1 + $0xa0] sm:$0xff]  ;;  %310 = vst [vmem:[#allocation1 + $0x10] ss:$2 sm:$0xff] %v224_v48  ;;  %v261_v53 = vld [vmem:[%s814_s1 + $0x110] sm:$0xff]  ;;  %v278_v54 = vld [vmem:[%s814_s1 + $0x198] sm:$0xff] }
  0x1d   : > { %377 = vmatpush.msra.mxu2 %v266_v32  ;;  %356 = vmatpush.msra.mxu1 %v251_v33  ;;  %v223_v51 = vld [vmem:[%s218_s14] sm:$0xff]  ;;  %v246_v55 = vld [vmem:[%s814_s1 + $0x98] sm:$0xff]  ;;  %v225_v56 = vld [vmem:[%s218_s14 + $0x10] sm:$0xf] }
  0x1e   : > { %338 = vmatpush.msra.mxu0 %v233_v34  ;;  %397 = vmatpush.msra.mxu3 %v282_v35  ;;  %308 = vst [vmem:[#allocation1] ss:$2 sm:$0xff] %v223_v51  ;;  %v228_v57 = vld [vmem:[%s814_s1 + $0x8] sm:$0xff]  ;;  %v277_v58 = vld [vmem:[%s814_s1 + $0x190] sm:$0xff]  ;;  %v227_v61 = vld [vmem:[%s814_s1] sm:$0xff] }
  0x1f   : > { %378 = vmatpush.msra.mxu2 %v265_v36  ;;  %357 = vmatpush.msra.mxu1 %v250_v37  ;;  %312 = vst [vmem:[#allocation1 + $0x20] ss:$2 sm:$0xff] %v225_v56  ;;  %v260_v59 = vld [vmem:[%s814_s1 + $0x108] sm:$0xff]  ;;  %v245_v60 = vld [vmem:[%s814_s1 + $0x90] sm:$0xff]  ;;  %v259_v0 = vld [vmem:[%s814_s1 + $0x100] sm:$0xff] }
  0x20   : > { %339 = vmatpush.msra.mxu0 %v232_v38  ;;  %398 = vmatpush.msra.mxu3 %v281_v39  ;;  %v276_v62 = vld [vmem:[%s814_s1 + $0x188] sm:$0xff]  ;;  %v299_v3 = vld [vmem:[%s814_s1 + $0x240] sm:$0xff]  ;;  %v298_v7 = vld [vmem:[%s814_s1 + $0x238] sm:$0xff] }
  0x21   : > { %379 = vmatpush.msra.mxu2 %v264_v40  ;;  %358 = vmatpush.msra.mxu1 %v249_v41  ;;  %v300_v63 = vld [vmem:[%s814_s1 + $0x248] sm:$0xf]  ;;  %v275_v4 = vld [vmem:[%s814_s1 + $0x180] sm:$0xff]  ;;  %v297_v10 = vld [vmem:[%s814_s1 + $0x230] sm:$0xff] }
  0x22   : > { %340 = vmatpush.msra.mxu0 %v231_v42  ;;  %399 = vmatpush.msra.mxu3 %v280_v43  ;;  %v244_v2 = vld [vmem:[%s814_s1 + $0x88] sm:$0xff]  ;;  %v243_v8 = vld [vmem:[%s814_s1 + $0x80] sm:$0xff]  ;;  %v294_v13 = vld [vmem:[%s814_s1 + $0x218] sm:$0xff] }
  0x23   : > { %380 = vmatpush.msra.mxu2 %v263_v44  ;;  %359 = vmatpush.msra.mxu1 %v248_v45  ;;  %v315_v1 = vld.sshfl [vmem:[#allocation1 + $0x10] sm:$0xff pattern:$0x75316420]  ;;  %v316_v6 = vld.sshfl [vmem:[#allocation1 + $0x18] sm:$0xff pattern:$0x75316420] }
  0x24   : > { %341 = vmatpush.msra.mxu0 %v230_v46  ;;  %400 = vmatpush.msra.mxu3 %v279_v47  ;;  %v296_v11 = vld [vmem:[%s814_s1 + $0x228] sm:$0xff]  ;;  %v295_v12 = vld [vmem:[%s814_s1 + $0x220] sm:$0xff]  ;;  %v293_v14 = vld [vmem:[%s814_s1 + $0x210] sm:$0xff] }
  0x25   : > { %381 = vmatpush.msra.mxu2 %v262_v49  ;;  %360 = vmatpush.msra.mxu1 %v247_v50  ;;  %v313_v5 = vld.sshfl [vmem:[#allocation1] sm:$0xff pattern:$0x75316420]  ;;  %v314_v9 = vld.sshfl [vmem:[#allocation1 + $0x8] sm:$0xff pattern:$0x75316420] }
  0x26   : > { %342 = vmatpush.msra.mxu0 %v229_v52  ;;  %401 = vmatpush.msra.mxu3 %v278_v54  ;;  %v292_v15 = vld [vmem:[%s814_s1 + $0x208] sm:$0xff]  ;;  %v291_v16 = vld [vmem:[%s814_s1 + $0x200] sm:$0xff] }
  0x27   : > { %382 = vmatpush.msra.mxu2 %v261_v53  ;;  %361 = vmatpush.msra.mxu1 %v246_v55  ;;  %v317_v17 = vld.sshfl [vmem:[#allocation1 + $0x20] sm:$0xff pattern:$0x75316420] }
  0x28   : > { %343 = vmatpush.msra.mxu0 %v228_v57  ;;  %402 = vmatpush.msra.mxu3 %v277_v58  ;;  %v226_v18 = vld [vmem:[%s817_s4] sm:$0x1f] }
  0x29   : > { %383 = vmatpush.msra.mxu2 %v260_v59  ;;  %362 = vmatpush.msra.mxu1 %v245_v60  ;;  %v433_v19 = vld [vmem:[%s816_s3] sm:$0x1]  ;;  %v430_v30 = vrot.slane %v226_v18, 1 }
  0x2a   : > { %344 = vmatpush.msra.mxu0 %v227_v61  ;;  %403 = vmatpush.msra.mxu3 %v276_v62  ;;  %v434_v20 = vadd.f32 %v433_v19, %v226_v18  ;;  %v512_v21 = vld [vmem:[%s815_s2] ss:$0 sm:$0xff] }
  0x2b   : > { %384 = vmatpush.msra.mxu2 %v259_v0  ;;  %363 = vmatpush.msra.mxu1 %v244_v2 }
  0x2c   : > { %499 = vmatpush.msk.msrb.mxu0 %vm325_vm0, %v300_v63  ;;  %385 = vmatmul.f32.vlgmr.msra.gmra.mxu2 %v315_v1  ;;  %436 = vst.msk [vmem:[%s222_s13] sm:$0x1] %vm435_vm2, %v434_v20 }
  0x2d   : > { %404 = vmatpush.msra.mxu3 %v275_v4  ;;  %345 = vmatmul.f32.vlgmr.msra.gmra.mxu0 %v313_v5 }
  0x2e   : > { %416 = vmatpush.msrb.mxu0 %v299_v3  ;;  %405 = vmatmul.f32.vlgmr.msra.gmra.mxu3 %v316_v6 }
  0x2f   : > { %364 = vmatpush.msra.mxu1 %v243_v8 }
  0x30   : > { %417 = vmatpush.msrb.mxu0 %v298_v7  ;;  %365 = vmatmul.f32.vlgmr.msra.gmra.mxu1 %v314_v9 }
  0x32   : > { %418 = vmatpush.msrb.mxu0 %v297_v10 }
  0x34   : > { %419 = vmatpush.msrb.mxu0 %v296_v11 }
  0x36   : > { %420 = vmatpush.msrb.mxu0 %v295_v12 }
  0x38   : > { %421 = vmatpush.msrb.mxu0 %v294_v13 }
  0x3a   : > { %422 = vmatpush.msrb.mxu0 %v293_v14 }
  0x3c   : > { %423 = vmatpush.msrb.mxu0 %v292_v15 }
  0x3e   : > { %424 = vmatpush.msrb.mxu0 %v291_v16 }
  0x3f   : > { %500 = vmatmul.msk.f32.vlgmr.msrb.gmra.mxu0 %vm322_vm1, %v317_v17 }
  0xaa   : > { %v346_v22 = vpop.f32.mrf.mxu0 }
  0xab   : > { %v347_v23 = vadd.f32 %v512_v21, %v346_v22 }
  0xad   : > { %v366_v24 = vpop.f32.mrf.mxu1 }
  0xae   : > { %v367_v25 = vadd.f32 %v366_v24, %v347_v23 }
  0xaf   : > { %v386_v26 = vpop.f32.mrf.mxu2 }
  0xb0   : > { %v387_v27 = vadd.f32 %v386_v26, %v367_v25 }
  0xb1   : > { %v406_v28 = vpop.f32.mrf.mxu3 }
  0xb2   : > { %v407_v29 = vadd.f32 %v406_v28, %v387_v27 }
  0xbc   : > { %v426_v31 = vpop.f32.mrf.mxu0 }
  0xbd   : > { %v427_v32 = vadd.f32 %v426_v31, %v407_v29 }
  0xbf   : > { %v432_v33 = vadd.f32 %v430_v30, %v427_v32 }
  0xc1   : > { %438 = vst.msk [vmem:[%s222_s13 + $0x1] sm:$0xf] %vm437_vm3, %v432_v33 }
  0xc2 PF: > { %s15_s18 = sadd.s32 1, %s519_s18  }
  0xc3   : > { %p12_p4 = scmp.ge.s32.totalorder %s15_s18, 4  }
  0xc5   :  { %14 = sbr.rel (!%p12_p4) target bundleno = 1 (0x1), region = 72 }

// kernel: eva_forward.7
= control target key start
LH: loop header
LB: loop body
LE: loop exit
PB: predicated region body
PF: predicated region fallthrough
CT: control target
= control target key end

     0   :  { %12 = vsyncpa [#allocation3], 0  ;;  %vm32_vm0 = vcmask 257024   ;;  %v255_v4 = vmov 4.0   ;;  %s333_s0 = inlined_call_operand.vmem [shape: f32[2,5,32], index: 0, kind: input, shape index: {}]   ;;  %s334_s1 = inlined_call_operand.vmem [shape: f32[1,32], index: 1, kind: input, shape index: {}]   ;;  %s335_s2 = inlined_call_operand.vmem [shape: f32[1,32], index: 2, kind: input, shape index: {}]   ;;  %s336_s3 = inlined_call_operand.vmem [shape: f32[32,128], index: 3, kind: input, shape index: {}]   ;;  %s337_s4 = inlined_call_operand.vmem [shape: f32[1,128], index: 4, kind: input, shape index: {}]   ;;  %s338_s5 = inlined_call_operand.hbm [shape: f32[2,32], index: 5, kind: output, shape index: {0}]   ;;  %s339_s6 = inlined_call_operand.hbm [shape: f32[2,128], index: 6, kind: output, shape index: {1}]  }
   0x1   :  { %v24_v0 = vld [vmem:[%s333_s0] sm:$0x1f]  ;;  %v25_v1 = vld [vmem:[%s333_s0 + $0x8] sm:$0x1f]  ;;  %197 = vrcp.f32 %v255_v4 }
   0x2   :  { %v28_v2 = vrot.slane %v24_v0, 1  ;;  %v29_v3 = vrot.slane %v25_v1, 1 }
   0x4   :  { %v33_v5 = vsel %vm32_vm0, %v28_v2, 0.0  ;;  %v40_v6 = vsel %vm32_vm0, %v29_v3, 0.0 }
   0x5   :  { %13 = vsyncpa [#allocation5], 0  ;;  %v34_v7 = vrot.slane %v33_v5, 4  ;;  %v41_v8 = vrot.slane %v40_v6, 4  ;;  %vm60_vm2 = vcmask 1041409   ;;  %vm63_vm3 = vcmask 254976  }
   0x6   :  { %v256_v29 = vmov 32.0   ;;  %v128_v46 = vld [vmem:[%s336_s3 + $0x18] sm:$0xff]  ;;  %v127_v47 = vld [vmem:[%s336_s3 + $0x10] sm:$0xff]  ;;  %v126_v48 = vld [vmem:[%s336_s3 + $0x8] sm:$0xff]  ;;  %vm133_vm8 = vcmask 261120   ;;  %s257_s11 = smov [#allocation2]  }
   0x7   :  { %v35_v9 = vadd.f32 %v34_v7, %v33_v5  ;;  %v42_v10 = vadd.f32 %v41_v8, %v40_v6  ;;  %v198_v11 = vpop.eup %197  ;;  %199 = vrcp.f32 %v256_v29  ;;  %148 = vmatpush.msra.mxu0 %v128_v46  ;;  %v125_v49 = vld [vmem:[%s336_s3] sm:$0xff]  ;;  %s162_s12 = sshll.u32 %s257_s11, 4  ;;  %s164_s15 = sshll.u32 %s338_s5, 4  ;;  %s163_s12 = int_to_ptr.vmem [resolvable:$true] %s162_s12  ;;  %s165_s15 = int_to_ptr.hbm [resolvable:$true] %s164_s15 }
   0x8   :  { %v48_v14 = vmul.f32 4.0, %v198_v11  ;;  %vm52_vm1 = vweird.f32 %v198_v11  ;;  %v194_v62 = vld [vmem:[%s334_s1] ss:$0 sm:$0xff]  ;;  %s258_s16 = smov [#allocation4]   ;;  %s175_s20 = sshll.u32 %s339_s6, 4  ;;  %s176_s20 = int_to_ptr.hbm [resolvable:$true] %s175_s20 }
   0x9   :  { %v36_v12 = vrot.slane %v35_v9, 2  ;;  %v43_v13 = vrot.slane %v42_v10, 2  ;;  %149 = vmatpush.msra.mxu0 %v127_v47  ;;  %v195_v2 = vld [vmem:[%s335_s2] ss:$0 sm:$0xff]  ;;  %s173_s17 = sshll.u32 %s258_s16, 4  ;;  %s174_s17 = int_to_ptr.vmem [resolvable:$true] %s173_s17 }
   0xa   :  { %v49_v17 = vsub.f32 1.0, %v48_v14  ;;  %v196_v7 = vld [vmem:[%s337_s4] ss:$0 sm:$0xff] }
   0xb   :  { %v37_v15 = vadd.f32 %v36_v12, %v35_v9  ;;  %v44_v16 = vadd.f32 %v43_v13, %v42_v10  ;;  %150 = vmatpush.msra.mxu0 %v126_v48 }
   0xc   :  { %v50_v20 = vmul.f32 %v198_v11, %v49_v17 }
   0xd   :  { %v38_v18 = vrot.slane %v37_v15, 1  ;;  %v45_v19 = vrot.slane %v44_v16, 1  ;;  %v200_v30 = vpop.eup %199  ;;  %151 = vmatpush.msra.mxu0 %v125_v49 }
   0xe   :  { %v51_v23 = vadd.f32 %v198_v11, %v50_v20  ;;  %v68_v31 = vmul.f32 32.0, %v200_v30  ;;  %vm72_vm4 = vweird.f32 %v200_v30 }
   0xf   :  { %v39_v21 = vadd.f32 %v38_v18, %v37_v15  ;;  %v46_v22 = vadd.f32 %v45_v19, %v44_v16 }
  0x10   :  { %v53_v24 = vsel %vm52_vm1, %v198_v11, %v51_v23  ;;  %v69_v32 = vsub.f32 1.0, %v68_v31 }
  0x11   :  { %v54_v25 = vmul.f32 %v53_v24, %v39_v21  ;;  %v55_v26 = vmul.f32 %v53_v24, %v46_v22 }
  0x12   :  { %v70_v33 = vmul.f32 %v200_v30, %v69_v32 }
  0x13   :  { %v61_v27 = vsel %vm60_vm2, %v55_v26, %v54_v25 }
  0x14   :  { %v64_v28 = vsel %vm63_vm3, %v61_v27, 0.0  ;;  %v71_v34 = vadd.f32 %v200_v30, %v70_v33 }
  0x15   :  { %65 = vadd.xlane.f32.xlu0 %v64_v28 }
  0x16   :  { %v73_v35 = vsel %vm72_vm4, %v200_v30, %v71_v34 }
  0x88   :  { %v66_v36 = vpop.xlane.xlu0 %65 }
  0x89   :  { %v74_v37 = vmul.f32 %v73_v35, %v66_v36 }
  0x8b   :  { %v76_v38 = vrot.slane %v74_v37, 1  ;;  %v79_v39 = vsub.f32 %v54_v25, %v74_v37 }
  0x8d   :  { %v80_v40 = vsub.f32 %v55_v26, %v76_v38  ;;  %v81_v42 = vmul.f32 %v79_v39, %v79_v39 }
  0x8f   :  { %v82_v41 = vmul.f32 %v80_v40, %v80_v40 }
  0x91   :  { %v85_v43 = vrot.slane %v82_v41, 7 }
  0x93   :  { %v86_v44 = vsel %vm60_vm2, %v85_v43, %v81_v42 }
  0x94   :  { %v88_v45 = vsel %vm63_vm3, %v86_v44, 0.0 }
  0x95   :  { %89 = vadd.xlane.f32.xlu0 %v88_v45 }
 0x108   :  { %v90_v50 = vpop.xlane.xlu0 %89 }
 0x109   :  { %v91_v51 = vmul.f32 %v90_v50, %v73_v35 }
 0x10b   :  { %v92_v52 = vadd.f32 1e-06, %v91_v51 }
 0x10d   :  { %201 = vrsqrt.f32 %v92_v52  ;;  %vm99_vm6 = vweird.f32 %v92_v52 }
 0x113   :  { %v202_v53 = vpop.eup %201 }
 0x114   :  { %v94_v54 = vmul.f32 %v202_v53, %v92_v52  ;;  %vm100_vm5 = vweird.f32 %v202_v53 }
 0x115   :  { %vm101_vm7 = vmor %vm99_vm6, %vm100_vm5 }
 0x116   :  { %v95_v55 = vmul.f32 %v202_v53, %v94_v54 }
 0x118   :  { %v96_v56 = vmul.f32 0.5, %v95_v55 }
 0x11a   :  { %v97_v57 = vsub.f32 1.5, %v96_v56 }
 0x11c   :  { %v98_v58 = vmul.f32 %v202_v53, %v97_v57 }
 0x11e   :  { %v102_v59 = vsel %vm101_vm7, %v202_v53, %v98_v58 }
 0x11f   :  { %v104_v60 = vrot.slane %v102_v59, 1  ;;  %v107_v61 = vmul.f32 %v102_v59, %v79_v39 }
 0x121   :  { %v108_v63 = vmul.f32 %v104_v60, %v80_v40  ;;  %v112_v0 = vmul.f32 %v194_v62, %v107_v61 }
 0x123   :  { %v113_v1 = vmul.f32 %v194_v62, %v108_v63  ;;  %v117_v4 = vadd.f32 %v195_v2, %v112_v0 }
 0x125   :  { %v118_v3 = vadd.f32 %v195_v2, %v113_v1 }
 0x127   :  { %v121_v5 = vrot.slane %v118_v3, 7 }
 0x129   :  { %v122_v6 = vsel %vm60_vm2, %v121_v5, %v117_v4 }
 0x12a   :  { %189 = vmatmul.msk.f32.vlgmr.msra.gmra.mxu0 %vm133_vm8, %v122_v6  ;;  %124 = vst.msk [vmem:[#allocation2] sm:$0x3] %vm63_vm3, %v122_v6 }
 0x12b   :  { %167 = dma.vmem_to_hbm [thread:$0]  %s163_s12, 32, %s165_s15, [#allocation3]  }
 0x1a7   :  { %v153_v8 = vpop.f32.mrf.mxu0 }
 0x1a8   :  { %v154_v9 = vadd.f32 %v196_v7, %v153_v8 }
 0x1aa   :  { %156 = vst [vmem:[#allocation4] sm:$0x3] %v154_v9 }
 0x1ab   :  { %178 = dma.vmem_to_hbm [thread:$0]  %s174_s17, 32, %s176_s20, [#allocation5]  }
 0x1ac   :  { %251 = dma.done.wait [#allocation3], 32  }
 0x1ad   :  { %252 = vsyncadd [#allocation3], 4294967264 }
 0x1ae   :  { %253 = dma.done.wait [#allocation5], 32  }
 0x1af   :  { %254 = vsyncadd [#allocation5], 4294967264 }
 0x1b0   :  { %187 = vsyncpa [#allocation3], 1 }
 0x1b1   :  { %188 = vsyncpa [#allocation5], 1 }

// kernel: eva_forward.5
= control target key start
LH: loop header
LB: loop body
LE: loop exit
PB: predicated region body
PF: predicated region fallthrough
CT: control target
= control target key end

     0   :  { %s1219_s25 = smov 0   ;;  %s1389_s0 = inlined_call_operand.vmem [shape: f32[2,5,32], index: 0, kind: input, shape index: {}]   ;;  %s1390_s1 = inlined_call_operand.vmem [shape: f32[1,32], index: 1, kind: input, shape index: {}]   ;;  %s1391_s2 = inlined_call_operand.vmem [shape: f32[1,32], index: 2, kind: input, shape index: {}]   ;;  %s1392_s3 = inlined_call_operand.vmem [shape: f32[32,96], index: 3, kind: input, shape index: {}]   ;;  %s1393_s4 = inlined_call_operand.vmem [shape: f32[1,96], index: 4, kind: input, shape index: {}]   ;;  %s1394_s5 = inlined_call_operand.vmem [shape: f32[32,32], index: 5, kind: input, shape index: {}]   ;;  %s1395_s6 = inlined_call_operand.vmem [shape: f32[1,32], index: 6, kind: input, shape index: {}]   ;;  %s1396_s7 = inlined_call_operand.vmem [shape: f32[1,32], index: 7, kind: input, shape index: {}]   ;;  %s1397_s8 = inlined_call_operand.vmem [shape: f32[1,32], index: 8, kind: input, shape index: {}]   ;;  %s1398_s9 = inlined_call_operand.vmem [shape: f32[32,64], index: 9, kind: input, shape index: {}]   ;;  %s1399_s10 = inlined_call_operand.vmem [shape: f32[1,64], index: 10, kind: input, shape index: {}]   ;;  %s1400_s11 = inlined_call_operand.vmem [shape: f32[64,32], index: 11, kind: input, shape index: {}]   ;;  %s1401_s12 = inlined_call_operand.vmem [shape: f32[1,32], index: 12, kind: input, shape index: {}]   ;;  %s1402_s13 = inlined_call_operand.vmem [shape: f32[2,5,32], index: 13, kind: output, shape index: {}]  }
   0x1 LB: > { %s1045_s26 = sadd.s32 4294967295, %s1135_s25   ;;  %p1049_p0 = scmp.ge.s32.totalorder %s1135_s25, 1  ;;  %s1135_s25 = sphi %s1219_s25, %s23_s25  }
   0x2   : > { %p386_p1 = scmp.lt.s32.totalorder %s1135_s25, 3 }
   0x4   : > { %p387_p2 = pnand %p1049_p0, %p386_p1 }
   0x5   : > { %p428_p3 = scmp.lt.s32.totalorder (!%p387_p2), %s1045_s26, 1  ;;  %s1138_s14 = smov (!%p387_p2), 88  }
   0x6   : > { %390 = sbr.rel (%p387_p2) target bundleno = 2022 (0x7e6), region = 72  ;;  %s1139_s15 = smov (!%p387_p2), 64  }
   0x7   : > { %s1140_s16 = smov (!%p387_p2), 96   ;;  %s1141_s17 = smov (!%p387_p2), 120  }
   0x8   : > { %s1142_s18 = smov (!%p387_p2), 72   ;;  %s1143_s19 = smov (!%p387_p2), 112  }
   0x9   : > { %s1144_s22 = smov (!%p387_p2), 56   ;;  %s1145_s23 = smov (!%p387_p2), 80  }
   0xa   : > { %s1146_s24 = smov (!%p387_p2), 104  }
   0xb   : > { %s1404_s26 = smov (!%p428_p3, %s1045_s26), 1  ;;  %vm439_vm0 = vcmask 258048   ;;  %v1137_v2 = vmov 32.0   ;;  %v480_v14 = vld [vmem:[%s1392_s3 + $0x18] sm:$0xff]  ;;  %v479_v15 = vld [vmem:[%s1392_s3 + $0x10] sm:$0xff]  ;;  %v478_v16 = vld [vmem:[%s1392_s3 + $0x8] sm:$0xff] }
   0xc   : > { %s1050_s27 = sshll.u32 %s1404_s26, 3  ;;  %1105 = vrcp.f32 %v1137_v2  ;;  %501 = vmatpush.msra.mxu0 %v480_v14  ;;  %v477_v17 = vld [vmem:[%s1392_s3] sm:$0xff]  ;;  %vm485_vm5 = vcmask 261120   ;;  %vm560_vm6 = vcmask 1044480   ;;  %vm517_vm7 = vcmask 64512   ;;  %v510_v60 = vld [vmem:[%s1394_s5 + $0x8] sm:$0xff] }
   0xd   : > { %s431_s30 = scalar_lea.vmem %s1389_s0, %s1050_s27  ;;  %v1097_v27 = vld [vmem:[%s1390_s1] ss:$0 sm:$0xff]  ;;  %vm543_vm8 = vcmask 36864   ;;  %vm556_vm9 = vcmask 39936   ;;  %vm966_vm13 = vcmask 523264  }
   0xe   : > { %v1235_v0 = vld [vmem:[%s431_s30] sm:$0x1f]  ;;  %502 = vmatpush.msra.mxu0 %v479_v15  ;;  %s1147_s30 = smov 48  }
   0xf   : > { %v440_v1 = vsel %vm439_vm0, %v1235_v0, 0.0  ;;  %v1098_v30 = vld [vmem:[%s1391_s2] ss:$0 sm:$0xff] }
  0x10   : > { %441 = vadd.xlane.f32.xlu0 %v440_v1  ;;  %503 = vmatpush.msra.mxu0 %v478_v16  ;;  %v1099_v33 = vld [vmem:[%s1393_s4] ss:$0 sm:$0xff] }
  0x11   : > { %v509_v38 = vld [vmem:[%s1394_s5] sm:$0xff] }
  0x12   : > { %v1106_v3 = vpop.eup %1105  ;;  %504 = vmatpush.msra.mxu0 %v477_v17  ;;  %691 = vmatpush.msra.mxu3 %v509_v38 }
  0x13   : > { %v444_v4 = vmul.f32 32.0, %v1106_v3  ;;  %vm448_vm1 = vweird.f32 %v1106_v3 }
  0x15   : > { %v445_v5 = vsub.f32 1.0, %v444_v4 }
  0x17   : > { %v446_v6 = vmul.f32 %v1106_v3, %v445_v5 }
  0x19   : > { %v447_v7 = vadd.f32 %v1106_v3, %v446_v6 }
  0x1b   : > { %v1239_v8 = vsel %vm448_vm1, %v1106_v3, %v447_v7 }
  0x83   : > { %v442_v9 = vpop.xlane.xlu0 %441 }
  0x84   : > { %v450_v10 = vmul.f32 %v1239_v8, %v442_v9 }
  0x86   : > { %v451_v11 = vsub.f32 %v1235_v0, %v450_v10 }
  0x88   : > { %v452_v12 = vmul.f32 %v451_v11, %v451_v11 }
  0x8a   : > { %v453_v13 = vsel %vm439_vm0, %v452_v12, 0.0 }
  0x8b   : > { %454 = vadd.xlane.f32.xlu0 %v453_v13 }
  0xfe   : > { %v455_v18 = vpop.xlane.xlu0 %454 }
  0xff   : > { %v456_v19 = vmul.f32 %v455_v18, %v1239_v8 }
 0x101   : > { %v457_v20 = vadd.f32 1e-06, %v456_v19 }
 0x103   : > { %1107 = vrsqrt.f32 %v457_v20  ;;  %vm464_vm3 = vweird.f32 %v457_v20 }
 0x109   : > { %v1108_v21 = vpop.eup %1107 }
 0x10a   : > { %v459_v22 = vmul.f32 %v1108_v21, %v457_v20  ;;  %vm465_vm2 = vweird.f32 %v1108_v21 }
 0x10b   : > { %vm466_vm4 = vmor %vm464_vm3, %vm465_vm2 }
 0x10c   : > { %v460_v23 = vmul.f32 %v1108_v21, %v459_v22 }
 0x10e   : > { %v461_v24 = vmul.f32 0.5, %v460_v23 }
 0x110   : > { %v462_v25 = vsub.f32 1.5, %v461_v24 }
 0x112   : > { %v463_v26 = vmul.f32 %v1108_v21, %v462_v25  ;;  %v511_v25 = vld [vmem:[%s1394_s5 + $0x10] sm:$0xff] }
 0x114   : > { %v467_v28 = vsel %vm466_vm4, %v1108_v21, %v463_v26 }
 0x115   : > { %v468_v29 = vmul.f32 %v467_v28, %v451_v11 }
 0x117   : > { %v472_v31 = vmul.f32 %v1097_v27, %v468_v29 }
 0x119   : > { %v476_v32 = vadd.f32 %v1098_v30, %v472_v31  ;;  %v512_v30 = vld [vmem:[%s1394_s5 + $0x18] sm:$0xff] }
 0x11b   : > { %1052 = vmatmul.msk.f32.vlgmr.msra.gmra.mxu0 %vm485_vm5, %v476_v32 }
 0x198   : > { %v506_v34 = vpop.f32.mrf.mxu0 }
 0x199   : > { %v1267_v35 = vadd.f32 %v1099_v33, %v506_v34 }
 0x19b   : > { %586 = vrot.lane.b32.xlu0 %v1267_v35, %s1138_s14  ;;  %554 = vrot.lane.b32.xlu2 %v1267_v35, %s1139_s15  ;;  %v513_v36 = vmul.f32 0.35355338, %v1267_v35  ;;  %s1148_s14 = smov 40  }
 0x19c   : > { %515 = vrot.lane.b32.xlu1 %v1267_v35, %s1140_s16 }
 0x1a3   : > { %584 = vrot.lane.b32.xlu0 %v513_v36, %s1141_s17 }
 0x1ab   : > { %788 = vrot.lane.b32.xlu0 %v1267_v35, %s1142_s18 }
 0x1b3   : > { %696 = vrot.lane.b32.xlu0 %v513_v36, %s1143_s19 }
 0x1f5   : > { %v555_v37 = vpop.permute.xlu2 %554 }
 0x1f6   : > { %1055 = vmatpush.msk.msra.mxu2 %vm560_vm6, %v555_v37 }
 0x20d   : > { %v587_v39 = vpop.permute.xlu0 %586 }
 0x20e   : > { %v516_v40 = vpop.permute.xlu1 %515  ;;  %1057 = vmatpush.xpose.msk.msrb.mxu0 %vm517_vm7, %v587_v39 }
 0x20f   : > { %1053 = vmatpush.xpose.msk.msra.mxu1 %vm517_vm7, %v516_v40 }
 0x212   : > { %1054 = vmatmul.msk.f32.vlgmr.msra.gmra.mxu1 %vm517_vm7, %v513_v36 }
 0x213   : > { %668 = vmatpush.msrb.mxu1 %v510_v60 }
 0x215   : > { %v585_v41 = vpop.permute.xlu0 %584  ;;  %780 = vmatpush.msra.mxu1 %v511_v25  ;;  %v1104_v25 = vld [vmem:[%s1401_s12] ss:$0 sm:$0xff] }
 0x216   : > { %1058 = vmatmul.msk.f32.vlgmr.msrb.gmra.mxu0 %vm517_vm7, %v585_v41  ;;  %v1100_v41 = vld [vmem:[%s1395_s6] ss:$0 sm:$0xff] }
 0x21d   : > { %v789_v42 = vpop.permute.xlu0 %788 }
 0x21e   : > { %1068 = vmatpush.xpose.msk.msrb.mxu3 %vm517_vm7, %v789_v42 }
 0x225   : > { %v697_v47 = vpop.permute.xlu0 %696 }
 0x28f   : > { %v540_v43 = vpop.f32.mrf.mxu1 }
 0x290   : > { %v544_v44 = vsel %vm543_vm8, %v540_v43, -inf }
 0x291   : > { %545 = vmax.xlane.f32.xlu1 %v544_v44 }
 0x293   : > { %v609_v45 = vpop.f32.mrf.mxu0 }
 0x294   : > { %v612_v46 = vsel %vm543_vm8, %v609_v45, -inf }
 0x295   : > { %613 = vmax.xlane.f32.xlu0 %v612_v46 }
 0x2a9   : > { %622 = vrot.lane.b32.xlu0 %v1267_v35, %s1144_s22 }
 0x2aa   : > { %698 = vrot.lane.b32.xlu1 %v1267_v35, %s1145_s23 }
 0x304   : > { %v546_v48 = vpop.xlane.xlu1 %545 }
 0x305   : > { %v547_v49 = vsub.f32 %v540_v43, %v546_v48 }
 0x307   : > { %v548_v50 = vmul.f32 1.442695, %v547_v49 }
 0x308   : > { %v614_v51 = vpop.xlane.xlu0 %613 }
 0x309   : > { %1109 = vpow2.f32 %v548_v50  ;;  %v615_v52 = vsub.f32 %v609_v45, %v614_v51  ;;  %v917_v50 = vld [vmem:[%s1398_s9 + $0x18] sm:$0xff]  ;;  %v915_v51 = vld [vmem:[%s1398_s9 + $0x8] sm:$0xff] }
 0x30b   : > { %v616_v53 = vmul.f32 1.442695, %v615_v52  ;;  %v914_v52 = vld [vmem:[%s1398_s9] sm:$0xff] }
 0x30d   : > { %1111 = vpow2.f32 %v616_v53 }
 0x30f   : > { %v1110_v54 = vpop.eup %1109 }
 0x310   : > { %1056 = vmatmul.msk.f32.vlgmr.msra.gmra.mxu2 %vm556_vm9, %v1110_v54  ;;  %v550_v55 = vsel %vm543_vm8, %v1110_v54, 0.0 }
 0x311   : > { %551 = vadd.xlane.f32.xlu2 %v550_v55 }
 0x313   : > { %v1112_v56 = vpop.eup %1111 }
 0x314   : > { %v618_v57 = vsel %vm543_vm8, %v1112_v56, 0.0 }
 0x315   : > { %619 = vadd.xlane.f32.xlu0 %v618_v57 }
 0x31b   : > { %v623_v58 = vpop.permute.xlu0 %622 }
 0x31c   : > { %v699_v59 = vpop.permute.xlu1 %698  ;;  %1059 = vmatpush.msk.msrb.mxu2 %vm560_vm6, %v623_v58 }
 0x31d   : > { %1063 = vmatpush.xpose.msk.msra.mxu0 %vm517_vm7, %v699_v59  ;;  %1060 = vmatmul.msk.f32.vlgmr.msrb.gmra.mxu2 %vm556_vm9, %v1112_v56 }
 0x320   : > { %1064 = vmatmul.msk.f32.vlgmr.msra.gmra.mxu0 %vm517_vm7, %v697_v47 }
 0x329   : > { %786 = vrot.lane.b32.xlu2 %v513_v36, %s1146_s24 }
 0x384   : > { %v552_v61 = vpop.xlane.xlu2 %551 }
 0x385   : > { %1113 = vrcp.f32 %v552_v61 }
 0x388   : > { %v620_v2 = vpop.xlane.xlu0 %619 }
 0x389   : > { %1115 = vrcp.f32 %v620_v2 }
 0x38b   : > { %v1114_v62 = vpop.eup %1113 }
 0x38c   : > { %v787_v3 = vpop.permute.xlu2 %786 }
 0x38f   : > { %v1116_v6 = vpop.eup %1115 }
 0x393   : > { %v580_v63 = vpop.f32.mrf.mxu2 }
 0x394   : > { %v583_v1 = vmul.f32 %v1114_v62, %v580_v63  ;;  %v1101_v62 = vld [vmem:[%s1396_s7] ss:$0 sm:$0xff] }
 0x396   : > { %1062 = vmatmul.msk.f32.vlgmr.msra.gmra.mxu3 %vm517_vm7, %v583_v1 }
 0x39d   : > { %v721_v4 = vpop.f32.mrf.mxu0 }
 0x39e   : > { %1069 = vmatmul.msk.f32.vlgmr.msrb.gmra.mxu3 %vm517_vm7, %v787_v3  ;;  %v724_v5 = vsel %vm543_vm8, %v721_v4, -inf }
 0x39f   : > { %725 = vmax.xlane.f32.xlu2 %v724_v5  ;;  %v960_v5 = vld [vmem:[%s1400_s11 + $0x30] sm:$0xff] }
 0x3a0   : > { %v646_v7 = vpop.f32.mrf.mxu2 }
 0x3a1   : > { %v649_v9 = vmul.f32 %v1116_v6, %v646_v7  ;;  %v959_v6 = vld [vmem:[%s1400_s11 + $0x28] sm:$0xff]  ;;  %v958_v7 = vld [vmem:[%s1400_s11 + $0x20] sm:$0xff] }
 0x3a3   : > { %1061 = vmatmul.msk.f32.vlgmr.msrb.gmra.mxu1 %vm517_vm7, %v649_v9  ;;  %v957_v9 = vld [vmem:[%s1400_s11 + $0x18] sm:$0xff] }
 0x3a4   : > { %937 = vmatpush.msrb.mxu1 %v917_v50 }
 0x3b7   : > { %734 = vrot.lane.b32.xlu2 %v1267_v35, %s1147_s30  ;;  %s435_s30 = scalar_lea.vmem %s1402_s13, %s1050_s27 }
 0x412   : > { %v726_v10 = vpop.xlane.xlu2 %725 }
 0x413   : > { %v727_v11 = vsub.f32 %v721_v4, %v726_v10  ;;  %v961_v4 = vld [vmem:[%s1400_s11 + $0x38] sm:$0xff]  ;;  %v956_v10 = vld [vmem:[%s1400_s11 + $0x10] sm:$0xff] }
 0x414   : > { %978 = vmatpush.msra.mxu3 %v961_v4 }
 0x415   : > { %v728_v12 = vmul.f32 1.442695, %v727_v11  ;;  %v955_v11 = vld [vmem:[%s1400_s11 + $0x8] sm:$0xff] }
 0x416   : > { %979 = vmatpush.msra.mxu3 %v960_v5 }
 0x417   : > { %1117 = vpow2.f32 %v728_v12  ;;  %v954_v12 = vld [vmem:[%s1400_s11] sm:$0xff] }
 0x418   : > { %980 = vmatpush.msra.mxu3 %v959_v6 }
 0x419   : > { %v693_v13 = vpop.f32.mrf.mxu3 }
 0x41a   : > { %v735_v14 = vpop.permute.xlu2 %734  ;;  %981 = vmatpush.msra.mxu3 %v958_v7 }
 0x41b   : > { %1065 = vmatpush.msk.msra.mxu2 %vm560_vm6, %v735_v14 }
 0x41c   : > { %982 = vmatpush.msra.mxu3 %v957_v9 }
 0x41d   : > { %v1118_v15 = vpop.eup %1117  ;;  %870 = vmatpush.msrb.mxu2 %v512_v30 }
 0x41e   : > { %1066 = vmatmul.msk.f32.vlgmr.msra.gmra.mxu2 %vm556_vm9, %v1118_v15  ;;  %v730_v18 = vsel %vm543_vm8, %v1118_v15, 0.0  ;;  %983 = vmatpush.msra.mxu3 %v956_v10 }
 0x420   : > { %984 = vmatpush.msra.mxu3 %v955_v11 }
 0x421   : > { %v811_v16 = vpop.f32.mrf.mxu3 }
 0x422   : > { %v814_v17 = vsel %vm543_vm8, %v811_v16, -inf  ;;  %985 = vmatpush.msra.mxu3 %v954_v12 }
 0x423   : > { %815 = vmax.xlane.f32.xlu1 %v814_v17 }
 0x43c   : > { %824 = vrot.lane.b32.xlu1 %v1267_v35, %s1148_s14  ;;  %v670_v35 = vpop.f32.mrf.mxu1 }
 0x43d   : > { %v694_v37 = vadd.f32 %v693_v13, %v670_v35  ;;  %v1103_v13 = vld [vmem:[%s1399_s10] ss:$0 sm:$0xff] }
 0x466   : > { %731 = vadd.xlane.f32.xlu1 %v730_v18 }
 0x496   : > { %v816_v19 = vpop.xlane.xlu1 %815 }
 0x497   : > { %v817_v20 = vsub.f32 %v811_v16, %v816_v19 }
 0x499   : > { %v818_v21 = vmul.f32 1.442695, %v817_v20 }
 0x49b   : > { %1119 = vpow2.f32 %v818_v21 }
 0x4a1   : > { %v1120_v22 = vpop.eup %1119  ;;  %v758_v28 = vpop.f32.mrf.mxu2 }
 0x4a2   : > { %v820_v23 = vsel %vm543_vm8, %v1120_v22, 0.0 }
 0x4a3   : > { %821 = vadd.xlane.f32.xlu2 %v820_v23 }
 0x4ae   : > { %v825_v24 = vpop.permute.xlu1 %824 }
 0x4af   : > { %1070 = vmatpush.msk.msrb.mxu0 %vm560_vm6, %v825_v24 }
 0x4b0   : > { %1071 = vmatmul.msk.f32.vlgmr.msrb.gmra.mxu0 %vm556_vm9, %v1120_v22 }
 0x4d9   : > { %v732_v26 = vpop.xlane.xlu1 %731 }
 0x4da   : > { %1121 = vrcp.f32 %v732_v26 }
 0x4e0   : > { %v1122_v27 = vpop.eup %1121 }
 0x4e1   : > { %v761_v29 = vmul.f32 %v1122_v27, %v758_v28 }
 0x4e3   : > { %1067 = vmatmul.msk.f32.vlgmr.msra.gmra.mxu1 %vm517_vm7, %v761_v29 }
 0x516   : > { %v822_v31 = vpop.xlane.xlu2 %821 }
 0x517   : > { %1123 = vrcp.f32 %v822_v31 }
 0x51d   : > { %v1124_v32 = vpop.eup %1123 }
 0x52d   : > { %v848_v33 = vpop.f32.mrf.mxu0 }
 0x52e   : > { %v851_v34 = vmul.f32 %v1124_v32, %v848_v33 }
 0x530   : > { %1072 = vmatmul.msk.f32.vlgmr.msrb.gmra.mxu2 %vm517_vm7, %v851_v34 }
 0x560   : > { %v782_v36 = vpop.f32.mrf.mxu1 }
 0x561   : > { %v785_v38 = vadd.f32 %v782_v36, %v694_v37 }
 0x5b3   : > { %v872_v39 = vpop.f32.mrf.mxu2 }
 0x5b4   : > { %v875_v40 = vadd.f32 %v872_v39, %v785_v38 }
 0x5b6   : > { %v876_v42 = vadd.f32 %v875_v40, %v1235_v0  ;;  %v916_v0 = vld [vmem:[%s1398_s9 + $0x10] sm:$0xff] }
 0x5b7   : > { %938 = vmatpush.msrb.mxu1 %v916_v0 }
 0x5b8   : > { %v1322_v43 = vadd.f32 %v1100_v41, %v876_v42 }
 0x5b9   : > { %939 = vmatpush.msrb.mxu1 %v915_v51 }
 0x5ba   : > { %v884_v44 = vsel %vm439_vm0, %v1322_v43, 0.0 }
 0x5bb   : > { %885 = vadd.xlane.f32.xlu0 %v884_v44  ;;  %940 = vmatpush.msrb.mxu1 %v914_v52 }
 0x62e   : > { %v886_v45 = vpop.xlane.xlu0 %885 }
 0x62f   : > { %v887_v46 = vmul.f32 %v886_v45, %v1239_v8 }
 0x631   : > { %v888_v47 = vsub.f32 %v1322_v43, %v887_v46 }
 0x633   : > { %v889_v48 = vmul.f32 %v888_v47, %v888_v47 }
 0x635   : > { %v890_v49 = vsel %vm439_vm0, %v889_v48, 0.0 }
 0x636   : > { %891 = vadd.xlane.f32.xlu0 %v890_v49 }
 0x6a9   : > { %v892_v53 = vpop.xlane.xlu0 %891 }
 0x6aa   : > { %v893_v54 = vmul.f32 %v892_v53, %v1239_v8  ;;  %v1102_v8 = vld [vmem:[%s1397_s8] ss:$0 sm:$0xff] }
 0x6ac   : > { %v894_v55 = vadd.f32 1e-06, %v893_v54 }
 0x6ae   : > { %1125 = vrsqrt.f32 %v894_v55  ;;  %vm901_vm11 = vweird.f32 %v894_v55 }
 0x6b4   : > { %v1126_v56 = vpop.eup %1125 }
 0x6b5   : > { %v896_v57 = vmul.f32 %v1126_v56, %v894_v55  ;;  %vm902_vm10 = vweird.f32 %v1126_v56 }
 0x6b6   : > { %vm903_vm12 = vmor %vm901_vm11, %vm902_vm10 }
 0x6b7   : > { %v897_v58 = vmul.f32 %v1126_v56, %v896_v57 }
 0x6b9   : > { %v898_v59 = vmul.f32 0.5, %v897_v58 }
 0x6bb   : > { %v899_v60 = vsub.f32 1.5, %v898_v59 }
 0x6bd   : > { %v900_v61 = vmul.f32 %v1126_v56, %v899_v60 }
 0x6bf   : > { %v904_v63 = vsel %vm903_vm12, %v1126_v56, %v900_v61 }
 0x6c0   : > { %v905_v1 = vmul.f32 %v904_v63, %v888_v47 }
 0x6c2   : > { %v909_v2 = vmul.f32 %v1101_v62, %v905_v1 }
 0x6c4   : > { %v913_v3 = vadd.f32 %v1102_v8, %v909_v2 }
 0x6c6   : > { %1073 = vmatmul.msk.f32.vlgmr.msrb.gmra.mxu1 %vm485_vm5, %v913_v3 }
 0x743   : > { %v942_v14 = vpop.f32.mrf.mxu1 }
 0x744   : > { %v943_v15 = vadd.f32 %v1103_v13, %v942_v14 }
 0x746   : > { %v945_v16 = vmul.f32 %v943_v15, %v943_v15 }
 0x748   : > { %v946_v17 = vmul.f32 %v945_v16, %v943_v15 }
 0x74a   : > { %v947_v18 = vmul.f32 0.044715, %v946_v17 }
 0x74c   : > { %v948_v19 = vadd.f32 %v947_v18, %v943_v15 }
 0x74e   : > { %v949_v20 = vmul.f32 0.7978846, %v948_v19 }
 0x750   : > { %1127 = vtanh.f32 %v949_v20 }
 0x756   : > { %v1128_v21 = vpop.eup %1127 }
 0x757   : > { %v951_v22 = vadd.f32 1.0, %v1128_v21 }
 0x759   : > { %v952_v23 = vmul.f32 0.5, %v951_v22 }
 0x75b   : > { %v953_v24 = vmul.f32 %v952_v23, %v943_v15 }
 0x75d   : > { %1074 = vmatmul.msk.f32.vlgmr.msra.gmra.mxu3 %vm966_vm13, %v953_v24 }
 0x7e0   : > { %v987_v26 = vpop.f32.mrf.mxu3 }
 0x7e1   : > { %v988_v27 = vadd.f32 %v1104_v25, %v987_v26 }
 0x7e3   : > { %v990_v28 = vadd.f32 %v988_v27, %v1322_v43 }
 0x7e5   : > { %991 = vst.msk [vmem:[%s435_s30] sm:$0x1f] %vm439_vm0, %v990_v28 }
 0x7e6 PF: > { %s23_s25 = sadd.s32 1, %s1135_s25  }
 0x7e7   : > { %p20_p4 = scmp.ge.s32.totalorder %s23_s25, 4  }
 0x7e9   :  { %22 = sbr.rel (!%p20_p4) target bundleno = 1 (0x1), region = 102 }

</bundles_post_ra>
